<compile_context>
chip_gen: v7x
topology: tpu7x:2x2x1
jax: 0.10.0
libtpu: 0.0.40
codegen_flags: <defaults>
</compile_context>

<pallas_src>
import math

import jax
import jax.numpy as jnp
from jax.experimental import pallas as pl
from jax.experimental.pallas import tpu as pltpu

DIM_STATE = 8                      # LunarLanderContinuous state dim
DIM_ACTION = 2                     # LunarLanderContinuous action dim
INPUT_SIZE = DIM_STATE + DIM_ACTION
H1, H2, OUT = 400, 200, 1          # logical sizes (match the PyTorch module)
H1_PAD, H2_PAD = 512, 256          # lane/sublane-aligned padded hidden widths
OUT_ROWS = 8                       # w3 padded to 8 sublane rows (row 0 is real)
TILE_B_MAX = 2048                  # batch tile; per-step VMEM ~12 MiB at 2048


def _round_up(x, m):
    return (x + m - 1) // m * m


def critic_kernel(xT_ref, w1T_ref, b1_ref, w2T_ref, b2_ref, w3_ref, b3_ref,
                  o_ref):
    """Fused 3-layer critic MLP, transposed layout: batch on the lane axis.

    Ragged final batch tile: out-of-range lanes carry garbage through the
    matmuls / ReLUs.  That is safe only because each batch element is an
    independent column (no cross-batch reduction) and OOB lanes are dropped on
    writeback.  Do NOT add cross-batch reductions without masking.
    """
    x = xT_ref[...].astype(jnp.bfloat16)                               # (10, tb)

    # Layer 1 -- concat fused in the wrapper -> single K=10 MXU pass.
    h1 = jnp.dot(w1T_ref[...], x, preferred_element_type=jnp.float32)  # (512, tb)
    h1 = jnp.maximum(h1 + b1_ref[...], 0.0)

    # Layer 2.
    h2 = jnp.dot(w2T_ref[...], h1.astype(jnp.bfloat16),
                 preferred_element_type=jnp.float32)                   # (256, tb)
    h2 = jnp.maximum(h2 + b2_ref[...], 0.0)

    # Layer 3: w3 stored as (8, 256) with only row 0 non-zero, so this is a
    # plain sublane-aligned matmul whose row 0 is the answer; the output stays
    # lane-dense (unmasked stores), no sublane->lane relayout needed.
    y = jnp.dot(w3_ref[...], h2.astype(jnp.bfloat16),
                preferred_element_type=jnp.float32)                    # (8, tb)
    o_ref[...] = y[0:1, :] + b3_ref[0]                                 # (1, tb)


def critic_forward(state, action, params):
    """Pallas implementation of Critic.forward(state, action) -> (B, 1)."""
    w1T, b1, w2T, b2, w3, b3 = params
    B = state.shape[0]

    # Fused concat + transpose (tiny: B*40 bytes).  Batch lands on the lane
    # axis inside the kernel.
    xT = jnp.concatenate([state, action], axis=1).T                    # (10, B)

    if B <= 256:
        # Small batch: single grid step; block dims equal the full array dims
        # so the (8,128) divisibility rule is satisfied for any B.
        tile_b = B
    else:
        # Force >= 2 grid steps so the "parallel" batch axis splits across both
        # v7x TensorCores; lane-axis tiles must be multiples of 128.
        tile_b = min(TILE_B_MAX, _round_up(pl.cdiv(B, 2), 128))
    grid = (pl.cdiv(B, tile_b),)

    in_specs = [
        pl.BlockSpec((INPUT_SIZE, tile_b), lambda i: (0, i)),          # x^T
        pl.BlockSpec((H1_PAD, INPUT_SIZE), lambda i: (0, 0)),          # w1^T
        pl.BlockSpec((H1_PAD, 1), lambda i: (0, 0)),                   # b1 col
        pl.BlockSpec((H2_PAD, H1_PAD), lambda i: (0, 0)),              # w2^T
        pl.BlockSpec((H2_PAD, 1), lambda i: (0, 0)),                   # b2 col
        pl.BlockSpec((OUT_ROWS, H2_PAD), lambda i: (0, 0)),            # w3 rows
        pl.BlockSpec(memory_space=pltpu.MemorySpace.SMEM),             # b3
    ]
    out_specs = pl.BlockSpec((1, tile_b), lambda i: (0, i))            # lane-dense

    # Advisory cost estimate so XLA schedules surrounding ops correctly.
    flops = 2 * B * (INPUT_SIZE * H1_PAD + H1_PAD * H2_PAD + H2_PAD * OUT_ROWS)
    bytes_accessed = (
        B * INPUT_SIZE * 4 + B * 4                                     # I/O
        + H1_PAD * INPUT_SIZE * 2 + H1_PAD * 4                         # w1, b1
        + H2_PAD * H1_PAD * 2 + H2_PAD * 4                             # w2, b2
        + OUT_ROWS * H2_PAD * 2 + 4)                                   # w3, b3
    cost = pl.CostEstimate(flops=flops, transcendentals=0,
                           bytes_accessed=bytes_accessed)

    out = pl.pallas_call(
        critic_kernel,
        grid=grid,
        in_specs=in_specs,
        out_specs=out_specs,
        out_shape=jax.ShapeDtypeStruct((1, B), jnp.float32),
        compiler_params=pltpu.CompilerParams(
            dimension_semantics=("parallel",),
            # Raise v5e's 16 MiB default scoped VMEM; 32 MiB is safe on
            # v5e/v6e (128 MiB physical) and v7x (64 MiB physical).
            vmem_limit_bytes=32 * 1024 * 1024),
        cost_estimate=cost,
    )(xT, w1T, b1, w2T, b2, w3, b3)

    return out.reshape(B, OUT)


def init_params(key):
    """PyTorch nn.Linear-style init (U[-1/sqrt(fan_in)]) with logical fan-ins,
    then transposed + zero-padded to aligned shapes and cast to bf16."""
    ks = jax.random.split(key, 6)

    def uniform(k, shape, fan_in):
        bound = 1.0 / math.sqrt(fan_in)
        return jax.random.uniform(k, shape, jnp.float32, -bound, bound)

    # Logical weights stored as [in, out] (== PyTorch W.T).
    w1 = uniform(ks[0], (INPUT_SIZE, H1), INPUT_SIZE)
    b1 = uniform(ks[1], (H1,), INPUT_SIZE)
    w2 = uniform(ks[2], (H1, H2), H1)
    b2 = uniform(ks[3], (H2,), H1)
    w3 = uniform(ks[4], (H2, OUT), H2)
    b3 = uniform(ks[5], (OUT,), H2)

    # Transposed, zero-padded kernel layouts (padded rows/cols stay exact zero).
    w1T = jnp.zeros((H1_PAD, INPUT_SIZE), jnp.float32).at[:H1, :].set(w1.T)
    b1c = jnp.zeros((H1_PAD, 1), jnp.float32).at[:H1, 0].set(b1)
    w2T = jnp.zeros((H2_PAD, H1_PAD), jnp.float32).at[:H2, :H1].set(w2.T)
    b2c = jnp.zeros((H2_PAD, 1), jnp.float32).at[:H2, 0].set(b2)
    w3r = jnp.zeros((OUT_ROWS, H2_PAD), jnp.float32).at[0, :H2].set(w3[:, 0])
    b3s = b3.reshape((1,)).astype(jnp.float32)

    return (w1T.astype(jnp.bfloat16), b1c, w2T.astype(jnp.bfloat16), b2c,
            w3r.astype(jnp.bfloat16), b3s)


def critic_ref(state, action, params):
    """Pure-JAX f32 reference (same stored bf16 weights, PyTorch forward)."""
    w1T, b1, w2T, b2, w3, b3 = params
    x = jnp.concatenate([state, action], axis=1)
    h1 = jnp.maximum(x @ w1T.astype(jnp.float32).T + b1[:, 0], 0.0)
    h2 = jnp.maximum(h1 @ w2T.astype(jnp.float32).T + b2[:, 0], 0.0)
    return h2 @ w3.astype(jnp.float32)[0:1, :].T + b3[0]


if __name__ == "__main__":
    key = jax.random.PRNGKey(0)
    kp, ks, ka = jax.random.split(key, 3)
    params = init_params(kp)

    # Small batch (single grid step).
    B = 8
    state = jax.random.normal(ks, (B, DIM_STATE), jnp.float32)
    action = jax.random.normal(ka, (B, DIM_ACTION), jnp.float32)
    out = jax.block_until_ready(critic_forward(state, action, params))
    ref = critic_ref(state, action, params)
    assert out.shape == (B, OUT), out.shape
    # bf16 activations into the MXU -> loosened tolerance (see header note).
    assert jnp.allclose(out, ref, atol=1e-2, rtol=1e-2), (out, ref)

    # Multi-step grid with a ragged last tile (exercises the megacore path).
    B2 = 384
    k2s, k2a = jax.random.split(jax.random.PRNGKey(1), 2)
    state2 = jax.random.normal(k2s, (B2, DIM_STATE), jnp.float32)
    action2 = jax.random.normal(k2a, (B2, DIM_ACTION), jnp.float32)
    out2 = jax.block_until_ready(critic_forward(state2, action2, params))
    ref2 = critic_ref(state2, action2, params)
    assert out2.shape == (B2, OUT), out2.shape
    assert jnp.allclose(out2, ref2, atol=1e-2, rtol=1e-2), (out2, ref2)

    print("KERNEL_OK")
</pallas_src>

<mosaic_0001>
module attributes {stable_mosaic.version = 11 : i64} {
  func.func @critic_kernel(%arg0: i32, %arg1: memref<10x8xf32, #tpu.memory_space<vmem>>, %arg2: memref<512x10xbf16, #tpu.memory_space<vmem>>, %arg3: memref<512x1xf32, #tpu.memory_space<vmem>>, %arg4: memref<256x512xbf16, #tpu.memory_space<vmem>>, %arg5: memref<256x1xf32, #tpu.memory_space<vmem>>, %arg6: memref<8x256xbf16, #tpu.memory_space<vmem>>, %arg7: memref<1xf32, #tpu.memory_space<smem>>, %arg8: memref<1x8xf32, #tpu.memory_space<vmem>>) attributes {dimension_semantics = [#tpu.dimension_semantics<parallel>], iteration_bounds = array<i64: 1>, scalar_prefetch = 0 : i64, scratch_operands = 0 : i64, tpu.core_type = #tpu.core_type<tc>, window_params = [{transform_indices = @transform_0, window_bounds = array<i64: 10, 8>}, {pipeline_mode = #tpu.pipeline_mode<synchronous>, transform_indices = @transform_1, window_bounds = array<i64: 512, 10>}, {pipeline_mode = #tpu.pipeline_mode<synchronous>, transform_indices = @transform_2, window_bounds = array<i64: 512, 1>}, {pipeline_mode = #tpu.pipeline_mode<synchronous>, transform_indices = @transform_3, window_bounds = array<i64: 256, 512>}, {pipeline_mode = #tpu.pipeline_mode<synchronous>, transform_indices = @transform_4, window_bounds = array<i64: 256, 1>}, {pipeline_mode = #tpu.pipeline_mode<synchronous>, transform_indices = @transform_5, window_bounds = array<i64: 8, 256>}, {transform_indices = @transform_6, window_bounds = array<i64: 1>}, {transform_indices = @transform_7, window_bounds = array<i64: 1, 8>}]} {
    %c0 = arith.constant 0 : index
    %c0_0 = arith.constant 0 : index
    %0 = vector.load %arg1[%c0, %c0_0] : memref<10x8xf32, #tpu.memory_space<vmem>>, vector<10x8xf32>
    %1 = arith.truncf %0 : vector<10x8xf32> to vector<10x8xbf16>
    %c0_1 = arith.constant 0 : index
    %c0_2 = arith.constant 0 : index
    %2 = vector.load %arg2[%c0_1, %c0_2] : memref<512x10xbf16, #tpu.memory_space<vmem>>, vector<512x10xbf16>
    %cst = arith.constant dense<0.000000e+00> : vector<512x8xf32>
    %3 = tpu.matmul %2, %1, %cst {dimension_numbers = #tpu.dot_dimension_numbers<[1], [0], [0], [1], [0, 0, 1, 1], [], []>} : vector<512x10xbf16>, vector<10x8xbf16>, vector<512x8xf32> -> vector<512x8xf32>
    %c0_3 = arith.constant 0 : index
    %c0_4 = arith.constant 0 : index
    %4 = vector.load %arg3[%c0_3, %c0_4] : memref<512x1xf32, #tpu.memory_space<vmem>>, vector<512x1xf32>
    %5 = vector.broadcast %4 : vector<512x1xf32> to vector<512x8xf32>
    %6 = arith.addf %3, %5 : vector<512x8xf32>
    %cst_5 = arith.constant 0.000000e+00 : f32
    %7 = vector.broadcast %cst_5 : f32 to vector<512x8xf32>
    %8 = arith.maximumf %6, %7 : vector<512x8xf32>
    %c0_6 = arith.constant 0 : index
    %c0_7 = arith.constant 0 : index
    %9 = vector.load %arg4[%c0_6, %c0_7] : memref<256x512xbf16, #tpu.memory_space<vmem>>, vector<256x512xbf16>
    %10 = arith.truncf %8 : vector<512x8xf32> to vector<512x8xbf16>
    %cst_8 = arith.constant dense<0.000000e+00> : vector<256x8xf32>
    %11 = tpu.matmul %9, %10, %cst_8 {dimension_numbers = #tpu.dot_dimension_numbers<[1], [0], [0], [1], [0, 0, 1, 1], [], []>} : vector<256x512xbf16>, vector<512x8xbf16>, vector<256x8xf32> -> vector<256x8xf32>
    %c0_9 = arith.constant 0 : index
    %c0_10 = arith.constant 0 : index
    %12 = vector.load %arg5[%c0_9, %c0_10] : memref<256x1xf32, #tpu.memory_space<vmem>>, vector<256x1xf32>
    %13 = vector.broadcast %12 : vector<256x1xf32> to vector<256x8xf32>
    %14 = arith.addf %11, %13 : vector<256x8xf32>
    %cst_11 = arith.constant 0.000000e+00 : f32
    %15 = vector.broadcast %cst_11 : f32 to vector<256x8xf32>
    %16 = arith.maximumf %14, %15 : vector<256x8xf32>
    %c0_12 = arith.constant 0 : index
    %c0_13 = arith.constant 0 : index
    %17 = vector.load %arg6[%c0_12, %c0_13] : memref<8x256xbf16, #tpu.memory_space<vmem>>, vector<8x256xbf16>
    %18 = arith.truncf %16 : vector<256x8xf32> to vector<256x8xbf16>
    %cst_14 = arith.constant dense<0.000000e+00> : vector<8x8xf32>
    %19 = tpu.matmul %17, %18, %cst_14 {dimension_numbers = #tpu.dot_dimension_numbers<[1], [0], [0], [1], [0, 0, 1, 1], [], []>} : vector<8x256xbf16>, vector<256x8xbf16>, vector<8x8xf32> -> vector<8x8xf32>
    %20 = vector.extract_strided_slice %19 {offsets = [0, 0], sizes = [1, 8], strides = [1, 1]} : vector<8x8xf32> to vector<1x8xf32>
    %c0_15 = arith.constant 0 : index
    %21 = memref.load %arg7[%c0_15] : memref<1xf32, #tpu.memory_space<smem>>
    %22 = vector.broadcast %21 : f32 to vector<1x8xf32>
    %23 = arith.addf %20, %22 : vector<1x8xf32>
    %c0_16 = arith.constant 0 : index
    %c0_17 = arith.constant 0 : index
    %24 = vector.load %arg8[%c0_16, %c0_17] : memref<1x8xf32, #tpu.memory_space<vmem>>, vector<1x8xf32>
    tpu.vector_store %arg8[%c0_16, %c0_17], %23 {strides = array<i32>} : memref<1x8xf32, #tpu.memory_space<vmem>>, vector<1x8xf32>,
    return
  }
  func.func @transform_0(%arg0: i32) -> (i32, i32) {
    %c0_i32 = arith.constant 0 : i32
    %c0_i32_0 = arith.constant 0 : i32
    return %c0_i32, %arg0 : i32, i32
  }
  func.func @transform_1(%arg0: i32) -> (i32, i32) {
    %c0_i32 = arith.constant 0 : i32
    %c0_i32_0 = arith.constant 0 : i32
    %c0_i32_1 = arith.constant 0 : i32
    return %c0_i32, %c0_i32_0 : i32, i32
  }
  func.func @transform_2(%arg0: i32) -> (i32, i32) {
    %c0_i32 = arith.constant 0 : i32
    %c0_i32_0 = arith.constant 0 : i32
    %c0_i32_1 = arith.constant 0 : i32
    return %c0_i32, %c0_i32_0 : i32, i32
  }
  func.func @transform_3(%arg0: i32) -> (i32, i32) {
    %c0_i32 = arith.constant 0 : i32
    %c0_i32_0 = arith.constant 0 : i32
    %c0_i32_1 = arith.constant 0 : i32
    return %c0_i32, %c0_i32_0 : i32, i32
  }
  func.func @transform_4(%arg0: i32) -> (i32, i32) {
    %c0_i32 = arith.constant 0 : i32
    %c0_i32_0 = arith.constant 0 : i32
    %c0_i32_1 = arith.constant 0 : i32
    return %c0_i32, %c0_i32_0 : i32, i32
  }
  func.func @transform_5(%arg0: i32) -> (i32, i32) {
    %c0_i32 = arith.constant 0 : i32
    %c0_i32_0 = arith.constant 0 : i32
    %c0_i32_1 = arith.constant 0 : i32
    return %c0_i32, %c0_i32_0 : i32, i32
  }
  func.func @transform_6(%arg0: i32) -> i32 {
    %c0_i32 = arith.constant 0 : i32
    %c0_i32_0 = arith.constant 0 : i32
    return %c0_i32 : i32
  }
  func.func @transform_7(%arg0: i32) -> (i32, i32) {
    %c0_i32 = arith.constant 0 : i32
    %c0_i32_0 = arith.constant 0 : i32
    return %c0_i32, %arg0 : i32, i32
  }
}

</mosaic_0001>

<bundles_post_ra>
// kernel: tpu_custom_call.1
= control target key start
LH: loop header
LB: loop body
LE: loop exit
PB: predicated region body
PF: predicated region fallthrough
CT: control target
= control target key end

     0   :  { %v2776_v3 = vmov 0   ;;  %vm737_vm0 = vcmask 1044480   ;;  %vm640_vm1 = vcmask 80896   ;;  %s3840_s0 = inlined_call_operand.vmem [shape: f32[10,8], index: 0, kind: input, shape index: {}]   ;;  %s3841_s1 = inlined_call_operand.vmem [shape: bf16[512,10], index: 1, kind: input, shape index: {}]   ;;  %s3842_s2 = inlined_call_operand.vmem [shape: f32[512,1], index: 2, kind: input, shape index: {}]   ;;  %s3843_s3 = inlined_call_operand.vmem [shape: bf16[256,512], index: 3, kind: input, shape index: {}]   ;;  %s3844_s4 = inlined_call_operand.vmem [shape: f32[256,1], index: 4, kind: input, shape index: {}]   ;;  %s3845_s5 = inlined_call_operand.vmem [shape: bf16[8,256], index: 5, kind: input, shape index: {}]   ;;  %s3846_s6 = inlined_call_operand.<no memory space> [shape: f32[1], index: 6, kind: input, shape index: {}]   ;;  %s3847_s7 = inlined_call_operand.hbm [shape: f32[1,8], index: 7, kind: output, shape index: {}]  }
   0x1   :  { %v112_v0 = vld [vmem:[%s3842_s2 + $0x80] sm:$0xff]  ;;  %2621 = vset.pattern.permute.xlu1 %v2776_v3  ;;  %2620 = vset.pattern.permute.xlu0 %v2776_v3  ;;  %v30_v4 = vld [vmem:[%s3840_s0 + $0x8] sm:$0x3]  ;;  %v2623_v9 = vld [vmem:[%s3841_s1 + $0x90] sm:$0xff]  }
   0x2   :  { %v96_v1 = vld [vmem:[%s3842_s2] sm:$0xff]  ;;  %v113_v5 = vld [vmem:[%s3842_s2 + $0x88] sm:$0xff]  ;;  %242 = vperm.xlu0 %2620, %v112_v0   ;;  %v2625_v12 = vld [vmem:[%s3841_s1 + $0x98] sm:$0xff]   ;;  %2586 = vmatprep.mubr.msk.bf16.mxu1 %vm640_vm1, %v2623_v9 }
   0x3   :  { %v29_v2 = vld [vmem:[%s3840_s0] sm:$0xff]  ;;  %v97_v6 = vld [vmem:[%s3842_s2 + $0x8] sm:$0xff]  ;;  %162 = vperm.xlu1 %2621, %v96_v1   ;;  %v2626_v15 = vld [vmem:[%s3841_s1 + $0x10] sm:$0xff]  }
   0x4   :  { %v31_v7 = vpack.c.bf16 %v30_v4, %v29_v2  ;;  %v2622_v8 = vld [vmem:[%s3841_s1] sm:$0xff]   ;;  %v2624_v11 = vld [vmem:[%s3841_s1 + $0x8] sm:$0xff]   ;;  %v2628_v19 = vld [vmem:[%s3841_s1 + $0x18] sm:$0xff]  }
   0x5   :  { %v144_v13 = vld [vmem:[%s3842_s2 + $0x180] sm:$0xff]  ;;  %2550 = vmatprep.mubr.msk.bf16.mxu0 %vm640_vm1, %v2622_v8  ;;  %v145_v14 = vld [vmem:[%s3842_s2 + $0x188] sm:$0xff]  ;;  %v114_v21 = vld [vmem:[%s3842_s2 + $0x90] sm:$0xff] }
   0x6   :  { %2616 = vmatprep.subr.msk.bf16.mxu0 %vm737_vm0, %v31_v7  ;;  %2617 = vmatprep.subr.msk.bf16.mxu1 %vm737_vm0, %v31_v7  ;;  %v739_v10 = vsel %vm737_vm0, %v31_v7, 0  ;;  %v2627_v16 = vld [vmem:[%s3841_s1 + $0xa0] sm:$0xff]   ;;  %v129_v18 = vld [vmem:[%s3842_s2 + $0x108] sm:$0xff]  ;;  %v2631_v23 = vld [vmem:[%s3841_s1 + $0xb0] sm:$0xff]  }
   0x7   :  { %2549 = vmatpush3.bf16.msra.mxu0 %v739_v10  ;;  %2615 = vmatpush3.bf16.msra.mxu1 %v739_v10  ;;  %v128_v17 = vld [vmem:[%s3842_s2 + $0x100] sm:$0xff]  ;;  %v2629_v20 = vld [vmem:[%s3841_s1 + $0xa8] sm:$0xff]   ;;  %v115_v24 = vld [vmem:[%s3842_s2 + $0x98] sm:$0xff] }
   0x8   :  { %247 = vperm.xlu0 %2620, %v113_v5   ;;  %167 = vperm.xlu1 %2621, %v97_v6   ;;  %v2630_v22 = vld [vmem:[%s3841_s1 + $0x20] sm:$0xff]   ;;  %v98_v25 = vld [vmem:[%s3842_s2 + $0x10] sm:$0xff]  ;;  %v99_v26 = vld [vmem:[%s3842_s2 + $0x18] sm:$0xff] }
   0x9   :  { %v2632_v27 = vld [vmem:[%s3841_s1 + $0x28] sm:$0xff]   ;;  %v2633_v28 = vld [vmem:[%s3841_s1 + $0xb8] sm:$0xff]   ;;  %v2634_v29 = vld [vmem:[%s3841_s1 + $0x30] sm:$0xff]  }
   0xa   :  { %2551 = vmatmul.mubr.msk.bf16.vlgmr.msra.gmra.mrb[0].mxu0 %vm640_vm1, %v2624_v11  ;;  %2587 = vmatmul.mubr.msk.bf16.vlgmr.msra.gmra.mrb[0].mxu1 %vm640_vm1, %v2625_v12  ;;  %v2635_v30 = vld [vmem:[%s3841_s1 + $0xc0] sm:$0xff]   ;;  %v146_v31 = vld [vmem:[%s3842_s2 + $0x190] sm:$0xff]  ;;  %v147_v32 = vld [vmem:[%s3842_s2 + $0x198] sm:$0xff] }
   0xb   :  { %2554 = vmatprep.mubr.msk.bf16.mxu0 %vm640_vm1, %v2626_v15  ;;  %2590 = vmatprep.mubr.msk.bf16.mxu1 %vm640_vm1, %v2627_v16  ;;  %v130_v33 = vld [vmem:[%s3842_s2 + $0x110] sm:$0xff]  ;;  %v131_v34 = vld [vmem:[%s3842_s2 + $0x118] sm:$0xff]  ;;  %v2637_v36 = vld [vmem:[%s3841_s1 + $0xc8] sm:$0xff]  }
   0xc   :  { %402 = vperm.xlu0 %2620, %v144_v13   ;;  %407 = vperm.xlu1 %2621, %v145_v14   ;;  %v2636_v35 = vld [vmem:[%s3841_s1 + $0x38] sm:$0xff]   ;;  %v2638_v37 = vld [vmem:[%s3841_s1 + $0x40] sm:$0xff]   ;;  %v2639_v38 = vld [vmem:[%s3841_s1 + $0xd0] sm:$0xff]  }
   0xd   :  { %v116_v39 = vld [vmem:[%s3842_s2 + $0xa0] sm:$0xff]  ;;  %v117_v40 = vld [vmem:[%s3842_s2 + $0xa8] sm:$0xff]  ;;  %v2641_v44 = vld [vmem:[%s3841_s1 + $0xd8] sm:$0xff]  }
   0xe   :  { %v100_v41 = vld [vmem:[%s3842_s2 + $0x20] sm:$0xff]  ;;  %v101_v42 = vld [vmem:[%s3842_s2 + $0x28] sm:$0xff]  ;;  %v2642_v45 = vld [vmem:[%s3841_s1 + $0x50] sm:$0xff]  }
   0xf   :  { %v2640_v43 = vld [vmem:[%s3841_s1 + $0x48] sm:$0xff]   ;;  %v2643_v46 = vld [vmem:[%s3841_s1 + $0xe0] sm:$0xff]   ;;  %v2644_v51 = vld [vmem:[%s3841_s1 + $0x58] sm:$0xff]  }
  0x10   :  { %322 = vperm.xlu0 %2620, %v128_v17   ;;  %327 = vperm.xlu1 %2621, %v129_v18   ;;  %v148_v47 = vld [vmem:[%s3842_s2 + $0x1a0] sm:$0xff]  ;;  %v149_v48 = vld [vmem:[%s3842_s2 + $0x1a8] sm:$0xff]  ;;  %v2647_v54 = vld [vmem:[%s3841_s1 + $0xf0] sm:$0xff]  }
  0x11   :  { %v132_v49 = vld [vmem:[%s3842_s2 + $0x120] sm:$0xff]  ;;  %v133_v50 = vld [vmem:[%s3842_s2 + $0x128] sm:$0xff]  ;;  %v118_v55 = vld [vmem:[%s3842_s2 + $0xb0] sm:$0xff] }
  0x12   :  { %2555 = vmatmul.mubr.msk.bf16.gmra.mrb[4].mxu0 %vm640_vm1, %v2628_v19  ;;  %2591 = vmatmul.mubr.msk.bf16.gmra.mrb[4].mxu1 %vm640_vm1, %v2629_v20  ;;  %v2645_v52 = vld [vmem:[%s3841_s1 + $0xe8] sm:$0xff]   ;;  %v2646_v53 = vld [vmem:[%s3841_s1 + $0x60] sm:$0xff]   ;;  %v119_v56 = vld [vmem:[%s3842_s2 + $0xb8] sm:$0xff] }
  0x13   :  { %2558 = vmatprep.mubr.msk.bf16.mxu0 %vm640_vm1, %v2630_v22  ;;  %2594 = vmatprep.mubr.msk.bf16.mxu1 %vm640_vm1, %v2631_v23  ;;  %v102_v57 = vld [vmem:[%s3842_s2 + $0x30] sm:$0xff]  ;;  %v103_v58 = vld [vmem:[%s3842_s2 + $0x38] sm:$0xff]  ;;  %v2648_v59 = vld [vmem:[%s3841_s1 + $0x68] sm:$0xff]  }
  0x14   :  { %252 = vperm.xlu0 %2620, %v114_v21   ;;  %257 = vperm.xlu1 %2621, %v115_v24   ;;  %v2649_v60 = vld [vmem:[%s3841_s1 + $0xf8] sm:$0xff]   ;;  %v2650_v61 = vld [vmem:[%s3841_s1 + $0x70] sm:$0xff]   ;;  %v2652_v3 = vld [vmem:[%s3841_s1 + $0x80] sm:$0xff]  }
  0x15   :  { %v150_v62 = vld [vmem:[%s3842_s2 + $0x1b0] sm:$0xff]  ;;  %v151_v63 = vld [vmem:[%s3842_s2 + $0x1b8] sm:$0xff]  ;;  %v120_v4 = vld [vmem:[%s3842_s2 + $0xc0] sm:$0xff] }
  0x16   :  { %v134_v0 = vld [vmem:[%s3842_s2 + $0x130] sm:$0xff]  ;;  %v135_v1 = vld [vmem:[%s3842_s2 + $0x138] sm:$0xff]  ;;  %v121_v5 = vld [vmem:[%s3842_s2 + $0xc8] sm:$0xff] }
  0x17   :  { %v2651_v2 = vld [vmem:[%s3841_s1 + $0x78] sm:$0xff]   ;;  %v104_v6 = vld [vmem:[%s3842_s2 + $0x40] sm:$0xff]  ;;  %v105_v7 = vld [vmem:[%s3842_s2 + $0x48] sm:$0xff] }
  0x18   :  { %172 = vperm.xlu0 %2620, %v98_v25   ;;  %177 = vperm.xlu1 %2621, %v99_v26   ;;  %v2653_v8 = vld [vmem:[%s3841_s1 + $0x88] sm:$0xff]   ;;  %v152_v9 = vld [vmem:[%s3842_s2 + $0x1c0] sm:$0xff]  ;;  %v122_v13 = vld [vmem:[%s3842_s2 + $0xd0] sm:$0xff] }
  0x19   :  { %v153_v10 = vld [vmem:[%s3842_s2 + $0x1c8] sm:$0xff]  ;;  %v136_v11 = vld [vmem:[%s3842_s2 + $0x140] sm:$0xff]  ;;  %v123_v14 = vld [vmem:[%s3842_s2 + $0xd8] sm:$0xff] }
  0x1a   :  { %2559 = vmatmul.mubr.msk.bf16.gmra.mrb[8].mxu0 %vm640_vm1, %v2632_v27  ;;  %2595 = vmatmul.mubr.msk.bf16.gmra.mrb[8].mxu1 %vm640_vm1, %v2633_v28  ;;  %v137_v12 = vld [vmem:[%s3842_s2 + $0x148] sm:$0xff]  ;;  %v106_v15 = vld [vmem:[%s3842_s2 + $0x50] sm:$0xff]  ;;  %v107_v16 = vld [vmem:[%s3842_s2 + $0x58] sm:$0xff] }
  0x1b   :  { %2562 = vmatprep.mubr.msk.bf16.mxu0 %vm640_vm1, %v2634_v29  ;;  %2598 = vmatprep.mubr.msk.bf16.mxu1 %vm640_vm1, %v2635_v30 }
  0x1c   :  { %412 = vperm.xlu0 %2620, %v146_v31   ;;  %417 = vperm.xlu1 %2621, %v147_v32  }
  0x20   :  { %332 = vperm.xlu0 %2620, %v130_v33   ;;  %337 = vperm.xlu1 %2621, %v131_v34  }
  0x22   :  { %2563 = vmatmul.mubr.msk.bf16.gmra.mrb[12].mxu0 %vm640_vm1, %v2636_v35  ;;  %2599 = vmatmul.mubr.msk.bf16.gmra.mrb[12].mxu1 %vm640_vm1, %v2637_v36 }
  0x23   :  { %2566 = vmatprep.mubr.msk.bf16.mxu0 %vm640_vm1, %v2638_v37  ;;  %2602 = vmatprep.mubr.msk.bf16.mxu1 %vm640_vm1, %v2639_v38 }
  0x24   :  { %262 = vperm.xlu0 %2620, %v116_v39   ;;  %267 = vperm.xlu1 %2621, %v117_v40  }
  0x28   :  { %182 = vperm.xlu0 %2620, %v100_v41   ;;  %187 = vperm.xlu1 %2621, %v101_v42  }
  0x2a   :  { %2567 = vmatmul.mubr.msk.bf16.gmra.mrb[16].mxu0 %vm640_vm1, %v2640_v43  ;;  %2603 = vmatmul.mubr.msk.bf16.gmra.mrb[16].mxu1 %vm640_vm1, %v2641_v44 }
  0x2b   :  { %2570 = vmatprep.mubr.msk.bf16.mxu0 %vm640_vm1, %v2642_v45  ;;  %2606 = vmatprep.mubr.msk.bf16.mxu1 %vm640_vm1, %v2643_v46 }
  0x2c   :  { %422 = vperm.xlu0 %2620, %v148_v47   ;;  %427 = vperm.xlu1 %2621, %v149_v48  }
  0x30   :  { %342 = vperm.xlu0 %2620, %v132_v49   ;;  %347 = vperm.xlu1 %2621, %v133_v50  }
  0x32   :  { %2571 = vmatmul.mubr.msk.bf16.gmra.mrb[20].mxu0 %vm640_vm1, %v2644_v51  ;;  %2607 = vmatmul.mubr.msk.bf16.gmra.mrb[20].mxu1 %vm640_vm1, %v2645_v52 }
  0x33   :  { %2574 = vmatprep.mubr.msk.bf16.mxu0 %vm640_vm1, %v2646_v53  ;;  %2610 = vmatprep.mubr.msk.bf16.mxu1 %vm640_vm1, %v2647_v54 }
  0x34   :  { %272 = vperm.xlu0 %2620, %v118_v55   ;;  %277 = vperm.xlu1 %2621, %v119_v56  }
  0x38   :  { %192 = vperm.xlu0 %2620, %v102_v57   ;;  %197 = vperm.xlu1 %2621, %v103_v58  }
  0x3a   :  { %2575 = vmatmul.mubr.msk.bf16.gmra.mrb[24].mxu0 %vm640_vm1, %v2648_v59  ;;  %2611 = vmatmul.mubr.msk.bf16.gmra.mrb[24].mxu1 %vm640_vm1, %v2649_v60 }
  0x3b   :  { %2578 = vmatprep.mubr.msk.bf16.mxu0 %vm640_vm1, %v2650_v61 }
  0x3c   :  { %432 = vperm.xlu0 %2620, %v150_v62   ;;  %437 = vperm.xlu1 %2621, %v151_v63  }
  0x40   :  { %352 = vperm.xlu0 %2620, %v134_v0   ;;  %357 = vperm.xlu1 %2621, %v135_v1  }
  0x42   :  { %2579 = vmatmul.mubr.msk.bf16.gmra.mrb[28].mxu0 %vm640_vm1, %v2651_v2 }
  0x43   :  { %2582 = vmatprep.mubr.msk.bf16.mxu0 %vm640_vm1, %v2652_v3 }
  0x44   :  { %282 = vperm.xlu0 %2620, %v120_v4   ;;  %287 = vperm.xlu1 %2621, %v121_v5  }
  0x48   :  { %202 = vperm.xlu0 %2620, %v104_v6   ;;  %207 = vperm.xlu1 %2621, %v105_v7  }
  0x4a   :  { %2583 = vmatmul.mubr.msk.bf16.gmra.mrb[32].mxu0 %vm640_vm1, %v2653_v8 }
  0x4c   :  { %442 = vperm.xlu0 %2620, %v152_v9   ;;  %447 = vperm.xlu1 %2621, %v153_v10  }
  0x50   :  { %362 = vperm.xlu0 %2620, %v136_v11   ;;  %367 = vperm.xlu1 %2621, %v137_v12  }
  0x54   :  { %292 = vperm.xlu0 %2620, %v122_v13   ;;  %297 = vperm.xlu1 %2621, %v123_v14  }
  0x58   :  { %212 = vperm.xlu0 %2620, %v106_v15   ;;  %217 = vperm.xlu1 %2621, %v107_v16  }
  0x59   :  { %13 = vsyncpa [#allocation4], 0  ;;  %v154_v17 = vld [vmem:[%s3842_s2 + $0x1d0] sm:$0xff]  ;;  %v155_v18 = vld [vmem:[%s3842_s2 + $0x1d8] sm:$0xff]  ;;  %s2777_s8 = smov [#allocation3]   ;;  %vm2123_vm2 = vcmask 57344  }
  0x5a   :  { %v138_v19 = vld [vmem:[%s3842_s2 + $0x150] sm:$0xff]  ;;  %v139_v20 = vld [vmem:[%s3842_s2 + $0x158] sm:$0xff]  ;;  %v124_v21 = vld [vmem:[%s3842_s2 + $0xe0] sm:$0xff]  ;;  %s2131_s9 = sshll.u32 %s2777_s8, 4  ;;  %s2132_s9 = int_to_ptr.vmem [resolvable:$true] %s2131_s9 }
  0x5b   :  { %v125_v22 = vld [vmem:[%s3842_s2 + $0xe8] sm:$0xff]  ;;  %v108_v23 = vld [vmem:[%s3842_s2 + $0x60] sm:$0xff]  ;;  %v126_v29 = vld [vmem:[%s3842_s2 + $0xf0] sm:$0xff]  ;;  %s2752_s10 = scalar_lea.vmem %s2132_s9, 16  ;;  %s2756_s11 = scalar_lea.vmem %s2132_s9, 32 }
  0x5c   :  { %452 = vperm.xlu0 %2620, %v154_v17   ;;  %457 = vperm.xlu1 %2621, %v155_v18   ;;  %v109_v24 = vld [vmem:[%s3842_s2 + $0x68] sm:$0xff]  ;;  %v156_v25 = vld [vmem:[%s3842_s2 + $0x1e0] sm:$0xff]  ;;  %v127_v30 = vld [vmem:[%s3842_s2 + $0xf8] sm:$0xff]  ;;  %p2753_p0 = scmp.ne.s32.totalorder %s2132_s9, %s2752_s10  ;;  %p2757_p1 = scmp.lt.s32.totalorder %s2132_s9, %s2132_s9 }
  0x5d   :  { %v157_v26 = vld [vmem:[%s3842_s2 + $0x1e8] sm:$0xff]  ;;  %v140_v27 = vld [vmem:[%s3842_s2 + $0x160] sm:$0xff]  ;;  %v110_v31 = vld [vmem:[%s3842_s2 + $0x70] sm:$0xff]  ;;  %p2758_p2 = scmp.lt.s32.totalorder %s2756_s11, %s2752_s10 }
  0x5e   :  { %v141_v28 = vld [vmem:[%s3842_s2 + $0x168] sm:$0xff]  ;;  %v111_v32 = vld [vmem:[%s3842_s2 + $0x78] sm:$0xff]  ;;  %v158_v33 = vld [vmem:[%s3842_s2 + $0x1f0] sm:$0xff] }
  0x5f   :  { %v159_v34 = vld [vmem:[%s3842_s2 + $0x1f8] sm:$0xff]  ;;  %v142_v35 = vld [vmem:[%s3842_s2 + $0x170] sm:$0xff]  ;;  %v1206_v37 = vld [vmem:[%s3844_s4 + $0x80] sm:$0xff]  ;;  %p2759_p3 = por %p2758_p2, %p2757_p1 }
  0x60   :  { %372 = vperm.xlu0 %2620, %v138_v19   ;;  %377 = vperm.xlu1 %2621, %v139_v20   ;;  %v143_v36 = vld [vmem:[%s3842_s2 + $0x178] sm:$0xff]  ;;  %v1207_v38 = vld [vmem:[%s3844_s4 + $0x88] sm:$0xff]  ;;  %v1190_v41 = vld [vmem:[%s3844_s4] sm:$0xff] }
  0x61   :  { %v1191_v42 = vld [vmem:[%s3844_s4 + $0x8] sm:$0xff]  ;;  %v1208_v45 = vld [vmem:[%s3844_s4 + $0x90] sm:$0xff]  ;;  %v1209_v46 = vld [vmem:[%s3844_s4 + $0x98] sm:$0xff]  ;;  %p2760_p4 = pnand %p2759_p3, %p2753_p0 }
  0x62   :  { %v1192_v49 = vld [vmem:[%s3844_s4 + $0x10] sm:$0xff]  ;;  %v1193_v50 = vld [vmem:[%s3844_s4 + $0x18] sm:$0xff]  ;;  %v1210_v53 = vld [vmem:[%s3844_s4 + $0xa0] sm:$0xff] }
  0x63   :  { %v1211_v54 = vld [vmem:[%s3844_s4 + $0xa8] sm:$0xff]  ;;  %v1194_v57 = vld [vmem:[%s3844_s4 + $0x20] sm:$0xff]  ;;  %v1212_v61 = vld [vmem:[%s3844_s4 + $0xb0] sm:$0xff] }
  0x64   :  { %302 = vperm.xlu0 %2620, %v124_v21   ;;  %307 = vperm.xlu1 %2621, %v125_v22   ;;  %v1195_v58 = vld [vmem:[%s3844_s4 + $0x28] sm:$0xff]  ;;  %v1213_v62 = vld [vmem:[%s3844_s4 + $0xb8] sm:$0xff]  ;;  %v1196_v1 = vld [vmem:[%s3844_s4 + $0x30] sm:$0xff] }
  0x65   :  { %v1197_v2 = vld [vmem:[%s3844_s4 + $0x38] sm:$0xff]  ;;  %v1214_v5 = vld [vmem:[%s3844_s4 + $0xc0] sm:$0xff]  ;;  %v1215_v6 = vld [vmem:[%s3844_s4 + $0xc8] sm:$0xff] }
  0x66   :  { %v1198_v9 = vld [vmem:[%s3844_s4 + $0x40] sm:$0xff]  ;;  %v1199_v10 = vld [vmem:[%s3844_s4 + $0x48] sm:$0xff]  ;;  %v1216_v14 = vld [vmem:[%s3844_s4 + $0xd0] sm:$0xff] }
  0x67   :  { %v2656_v11 = vld [vmem:[%s3843_s3 + $0x4] ss:$16 sps:$4 sm:$0xff]   ;;  %v1217_v15 = vld [vmem:[%s3844_s4 + $0xd8] sm:$0xff] }
  0x68   :  { %222 = vperm.xlu0 %2620, %v108_v23   ;;  %227 = vperm.xlu1 %2621, %v109_v24   ;;  %v1200_v18 = vld [vmem:[%s3844_s4 + $0x50] sm:$0xff]  ;;  %v1201_v19 = vld [vmem:[%s3844_s4 + $0x58] sm:$0xff]  ;;  %v1218_v22 = vld [vmem:[%s3844_s4 + $0xe0] sm:$0xff] }
  0x69   :  { %1734 = vmatprep.mubr.bf16.mxu1 %v2656_v11  ;;  %v1219_v23 = vld [vmem:[%s3844_s4 + $0xe8] sm:$0xff] }
  0x6c   :  { %462 = vperm.xlu0 %2620, %v156_v25   ;;  %467 = vperm.xlu1 %2621, %v157_v26   ;;  %v1202_v26 = vld [vmem:[%s3844_s4 + $0x60] sm:$0xff] }
  0x70   :  { %382 = vperm.xlu0 %2620, %v140_v27   ;;  %387 = vperm.xlu1 %2621, %v141_v28   ;;  %v1203_v27 = vld [vmem:[%s3844_s4 + $0x68] sm:$0xff] }
  0x74   :  { %312 = vperm.xlu0 %2620, %v126_v29   ;;  %317 = vperm.xlu1 %2621, %v127_v30   ;;  %v1220_v30 = vld [vmem:[%s3844_s4 + $0xf0] sm:$0xff] }
  0x78   :  { %232 = vperm.xlu0 %2620, %v110_v31   ;;  %237 = vperm.xlu1 %2621, %v111_v32   ;;  %v1221_v31 = vld [vmem:[%s3844_s4 + $0xf8] sm:$0xff] }
  0x7c   :  { %472 = vperm.xlu0 %2620, %v158_v33   ;;  %477 = vperm.xlu1 %2621, %v159_v34   ;;  %v1204_v34 = vld [vmem:[%s3844_s4 + $0x70] sm:$0xff] }
  0x80   :  { %392 = vperm.xlu0 %2620, %v142_v35   ;;  %397 = vperm.xlu1 %2621, %v143_v36   ;;  %v1205_v35 = vld [vmem:[%s3844_s4 + $0x78] sm:$0xff] }
  0x81   :  { %v3150_v39 = vpop.permute.xlu0 %242 }
  0x82   :  { %v3152_v40 = vpop.permute.xlu1 %162 }
  0x84   :  { %1304 = vperm.xlu0 %2620, %v1206_v37   ;;  %1309 = vperm.xlu1 %2621, %v1207_v38  }
  0x87   :  { %v3160_v43 = vpop.permute.xlu0 %247  ;;  %v3162_v44 = vpop.permute.xlu1 %167 }
  0x88   :  { %1224 = vperm.xlu0 %2620, %v1190_v41   ;;  %1229 = vperm.xlu1 %2621, %v1191_v42   ;;  %v2668_v42 = vld [vmem:[%s3843_s3 + $0xc] ss:$16 sps:$4 sm:$0xff]  }
  0x89   :  { %1895 = vmatprep.mubr.bf16.mxu0 %v2668_v42 }
  0x8b   :  { %v3170_v47 = vpop.permute.xlu0 %402  ;;  %v3172_v48 = vpop.permute.xlu1 %407 }
  0x8c   :  { %1314 = vperm.xlu0 %2620, %v1208_v45   ;;  %1319 = vperm.xlu1 %2621, %v1209_v46  }
  0x8f   :  { %v3180_v51 = vpop.permute.xlu0 %322  ;;  %v3182_v52 = vpop.permute.xlu1 %327 }
  0x90   :  { %3848 = vst [vmem:[#allocation6_spill] sm:$0xff] %v3182_v52  ;;  %1234 = vperm.xlu0 %2620, %v1192_v49   ;;  %1239 = vperm.xlu1 %2621, %v1193_v50  }
  0x93   :  { %v3190_v55 = vpop.permute.xlu0 %252  ;;  %v3192_v56 = vpop.permute.xlu1 %257 }
  0x94   :  { %1324 = vperm.xlu0 %2620, %v1210_v53   ;;  %1329 = vperm.xlu1 %2621, %v1211_v54  }
  0x97   :  { %v3200_v59 = vpop.permute.xlu0 %172  ;;  %v3202_v60 = vpop.permute.xlu1 %177 }
  0x98   :  { %1244 = vperm.xlu0 %2620, %v1194_v57   ;;  %1249 = vperm.xlu1 %2621, %v1195_v58  }
  0x9b   :  { %v3210_v63 = vpop.permute.xlu0 %412  ;;  %v3212_v0 = vpop.permute.xlu1 %417 }
  0x9c   :  { %1334 = vperm.xlu0 %2620, %v1212_v61   ;;  %1339 = vperm.xlu1 %2621, %v1213_v62  }
  0x9f   :  { %v3220_v3 = vpop.permute.xlu0 %332  ;;  %v3222_v4 = vpop.permute.xlu1 %337 }
  0xa0   :  { %3849 = vst [vmem:[#allocation7_spill] sm:$0xff] %v3222_v4  ;;  %1254 = vperm.xlu0 %2620, %v1196_v1   ;;  %1259 = vperm.xlu1 %2621, %v1197_v2  }
  0xa3   :  { %v3230_v7 = vpop.permute.xlu0 %262  ;;  %v3232_v8 = vpop.permute.xlu1 %267 }
  0xa4   :  { %1344 = vperm.xlu0 %2620, %v1214_v5   ;;  %1349 = vperm.xlu1 %2621, %v1215_v6  }
  0xa7   :  { %v3243_v12 = vpop.permute.xlu0 %182  ;;  %v3245_v13 = vpop.permute.xlu1 %187 }
  0xa8   :  { %1264 = vperm.xlu0 %2620, %v1198_v9   ;;  %1269 = vperm.xlu1 %2621, %v1199_v10  }
  0xab   :  { %v3253_v16 = vpop.permute.xlu0 %422  ;;  %v3255_v17 = vpop.permute.xlu1 %427 }
  0xac   :  { %1354 = vperm.xlu0 %2620, %v1216_v14   ;;  %1359 = vperm.xlu1 %2621, %v1217_v15  }
  0xaf   :  { %v343_v20 = vpop.permute.xlu0 %342  ;;  %v3263_v21 = vpop.permute.xlu1 %347 }
  0xb0   :  { %1274 = vperm.xlu0 %2620, %v1200_v18   ;;  %1279 = vperm.xlu1 %2621, %v1201_v19  }
  0xb3   :  { %v3271_v24 = vpop.permute.xlu0 %272  ;;  %v3273_v25 = vpop.permute.xlu1 %277 }
  0xb4   :  { %1364 = vperm.xlu0 %2620, %v1218_v22   ;;  %1369 = vperm.xlu1 %2621, %v1219_v23  }
  0xb7   :  { %v3281_v28 = vpop.permute.xlu0 %192  ;;  %v3283_v29 = vpop.permute.xlu1 %197 }
  0xb8   :  { %1284 = vperm.xlu0 %2620, %v1202_v26   ;;  %1289 = vperm.xlu1 %2621, %v1203_v27  }
  0xbb   :  { %v3291_v32 = vpop.permute.xlu0 %432  ;;  %v3293_v33 = vpop.permute.xlu1 %437 }
  0xbc   :  { %1374 = vperm.xlu0 %2620, %v1220_v30   ;;  %1379 = vperm.xlu1 %2621, %v1221_v31  }
  0xbf   :  { %v353_v36 = vpop.permute.xlu0 %352  ;;  %v358_v37 = vpop.permute.xlu1 %357 }
  0xc0   :  { %1294 = vperm.xlu0 %2620, %v1204_v34   ;;  %1299 = vperm.xlu1 %2621, %v1205_v35  }
  0xc3   :  { %v3301_v38 = vpop.permute.xlu0 %282  ;;  %v3303_v41 = vpop.permute.xlu1 %287 }
  0xc7   :  { %v3308_v45 = vpop.permute.xlu0 %202  ;;  %v3310_v46 = vpop.permute.xlu1 %207 }
  0xcb   :  { %v3312_v49 = vpop.permute.xlu0 %442  ;;  %v3314_v50 = vpop.permute.xlu1 %447 }
  0xcf   :  { %v363_v53 = vpop.permute.xlu0 %362  ;;  %v368_v54 = vpop.permute.xlu1 %367 }
  0xd3   :  { %v3316_v57 = vpop.permute.xlu0 %292  ;;  %v3318_v58 = vpop.permute.xlu1 %297 }
  0xd7   :  { %v3320_v61 = vpop.permute.xlu0 %212  ;;  %v3322_v62 = vpop.permute.xlu1 %217 }
  0xdb   :  { %v3324_v1 = vpop.permute.xlu0 %452  ;;  %v3326_v2 = vpop.permute.xlu1 %457 }
  0xdd   :  { %v2552_v5 = vpop.f32.mrb[0].mxu0  ;;  %v2588_v6 = vpop.f32.mrb[0].mxu1 }
  0xde   :  { %v784_v9 = vadd.f32 %v2552_v5, %v3200_v59  ;;  %v928_v10 = vadd.f32 %v2588_v6, %v353_v36  ;;  %v775_v11 = vpop.f32.mrb[1].mxu0  ;;  %v919_v14 = vpop.f32.mrb[1].mxu1 }
  0xdf   :  { %v776_v15 = vadd.f32 %v775_v11, %v3152_v40  ;;  %v920_v18 = vadd.f32 %v919_v14, %v343_v20  ;;  %v2553_v19 = vpop.f32.mrb[2].mxu0  ;;  %v2589_v22 = vpop.f32.mrb[2].mxu1 }
  0xe0   :  { %v787_v23 = vadd.f32 %v2553_v19, %v3202_v60  ;;  %v931_v26 = vadd.f32 %v2589_v22, %v358_v37  ;;  %v373_v27 = vpop.permute.xlu0 %372  ;;  %v378_v30 = vpop.permute.xlu1 %377  ;;  %v1032_v31 = vmax.f32 %v784_v9, 0.0  ;;  %v1068_v34 = vmax.f32 %v928_v10, 0.0 }
  0xe1   :  { %v778_v35 = vpop.f32.mrb[3].mxu0  ;;  %v922_v42 = vpop.f32.mrb[3].mxu1  ;;  %v1030_v5 = vmax.f32 %v776_v15, 0.0  ;;  %v1066_v40 = vmax.f32 %v920_v18, 0.0 }
  0xe2   :  { %v1033_v52 = vmax.f32 %v787_v23, 0.0  ;;  %v1069_v4 = vmax.f32 %v931_v26, 0.0  ;;  %v779_v59 = vadd.f32 %v778_v35, %v3162_v44  ;;  %v923_v36 = vadd.f32 %v922_v42, %v3263_v21 }
  0xe4   :  { %v3333_v20 = vpack.c.bf16 %v1033_v52, %v1032_v31  ;;  %v3335_v6 = vpack.c.bf16 %v1069_v4, %v1068_v34  ;;  %v1031_v60 = vmax.f32 %v779_v59, 0.0  ;;  %v1067_v37 = vmax.f32 %v923_v36, 0.0  ;;  %v3337_v11 = vpop.permute.xlu0 %302  ;;  %v3339_v9 = vpop.permute.xlu1 %307 }
  0xe5   :  { %v2556_v10 = vpop.f32.mrb[4].mxu0  ;;  %v2592_v14 = vpop.f32.mrb[4].mxu1 }
  0xe6   :  { %3850 = vst [vmem:[#allocation8_spill] sm:$0xff] %v3335_v6  ;;  %v3341_v19 = vpack.c.bf16 %v1031_v60, %v1030_v5  ;;  %v3343_v22 = vpack.c.bf16 %v1067_v37, %v1066_v40  ;;  %v800_v44 = vadd.f32 %v2556_v10, %v3281_v28  ;;  %v944_v21 = vadd.f32 %v2592_v14, %v373_v27  ;;  %v791_v15 = vpop.f32.mrb[5].mxu0  ;;  %v935_v52 = vpop.f32.mrb[5].mxu1 }
  0xe7   :  { %v792_v4 = vadd.f32 %v791_v15, %v3243_v12  ;;  %v936_v18 = vadd.f32 %v935_v52, %v363_v53  ;;  %v2557_v23 = vpop.f32.mrb[6].mxu0  ;;  %v2593_v26 = vpop.f32.mrb[6].mxu1 }
  0xe8   :  { %v803_v31 = vadd.f32 %v2557_v23, %v3283_v29  ;;  %v947_v34 = vadd.f32 %v2593_v26, %v378_v30  ;;  %v223_v35 = vpop.permute.xlu0 %222  ;;  %v3348_v42 = vpop.permute.xlu1 %227  ;;  %v1036_v59 = vmax.f32 %v800_v44, 0.0  ;;  %v1072_v36 = vmax.f32 %v944_v21, 0.0 }
  0xe9   :  { %v794_v5 = vpop.f32.mrb[7].mxu0  ;;  %v938_v40 = vpop.f32.mrb[7].mxu1  ;;  %v1034_v10 = vmax.f32 %v792_v4, 0.0  ;;  %v1070_v12 = vmax.f32 %v936_v18, 0.0 }
  0xea   :  { %v1037_v60 = vmax.f32 %v803_v31, 0.0  ;;  %v1073_v28 = vmax.f32 %v947_v34, 0.0  ;;  %v795_v27 = vadd.f32 %v794_v5, %v3245_v13  ;;  %v939_v37 = vadd.f32 %v938_v40, %v368_v54 }
  0xec   :  { %v3351_v53 = vpack.c.bf16 %v1037_v60, %v1036_v59  ;;  %v3353_v14 = vpack.c.bf16 %v1073_v28, %v1072_v36  ;;  %v1035_v29 = vmax.f32 %v795_v27, 0.0  ;;  %v1071_v30 = vmax.f32 %v939_v37, 0.0  ;;  %v3355_v15 = vpop.permute.xlu0 %462  ;;  %v3357_v52 = vpop.permute.xlu1 %467 }
  0xed   :  { %v2560_v44 = vpop.f32.mrb[8].mxu0  ;;  %v3359_v21 = vpop.f32.mrb[8].mxu1 }
  0xee   :  { %3851 = vst [vmem:[#allocation9_spill] sm:$0xff] %v3353_v14  ;;  %v3361_v23 = vpack.c.bf16 %v1035_v29, %v1034_v10  ;;  %v3363_v26 = vpack.c.bf16 %v1071_v30, %v1070_v12  ;;  %v816_v13 = vadd.f32 %v2560_v44, %v3320_v61  ;;  %v807_v54 = vpop.f32.mrb[9].mxu0  ;;  %v951_v4 = vpop.f32.mrb[9].mxu1 }
  0xef   :  { %v2561_v18 = vpop.f32.mrb[10].mxu0  ;;  %v3366_v31 = vpop.f32.mrb[10].mxu1  ;;  %v808_v34 = vadd.f32 %v807_v54, %v3308_v45 }
  0xf0   :  { %3852 = vst [vmem:[#allocation10_spill] sm:$0xff] %v3363_v26  ;;  %v819_v59 = vadd.f32 %v2561_v18, %v3322_v62  ;;  %v383_v36 = vpop.permute.xlu0 %382  ;;  %v388_v5 = vpop.permute.xlu1 %387  ;;  %v1040_v27 = vmax.f32 %v816_v13, 0.0 }
  0xf1   :  { %v952_v40 = vadd.f32 %v951_v4, %v383_v36  ;;  %v810_v60 = vpop.f32.mrb[11].mxu0  ;;  %v954_v28 = vpop.f32.mrb[11].mxu1  ;;  %v1038_v29 = vmax.f32 %v808_v34, 0.0 }
  0xf2   :  { %v1041_v37 = vmax.f32 %v819_v59, 0.0  ;;  %v811_v10 = vadd.f32 %v810_v60, %v3310_v46  ;;  %v955_v12 = vadd.f32 %v954_v28, %v388_v5 }
  0xf3   :  { %v1074_v61 = vmax.f32 %v952_v40, 0.0 }
  0xf4   :  { %v3371_v30 = vpack.c.bf16 %v1041_v37, %v1040_v27  ;;  %v1039_v44 = vmax.f32 %v811_v10, 0.0  ;;  %v1075_v14 = vmax.f32 %v955_v12, 0.0  ;;  %v3373_v26 = vpop.permute.xlu0 %312  ;;  %v3375_v45 = vpop.permute.xlu1 %317 }
  0xf5   :  { %v2564_v62 = vpop.f32.mrb[12].mxu0  ;;  %v2600_v54 = vpop.f32.mrb[12].mxu1 }
  0xf6   :  { %v3377_v4 = vpack.c.bf16 %v1039_v44, %v1038_v29  ;;  %v3379_v18 = vpack.c.bf16 %v1075_v14, %v1074_v61  ;;  %v976_v13 = vadd.f32 %v2600_v54, %v3210_v63  ;;  %v823_v46 = vpop.f32.mrb[13].mxu0  ;;  %v967_v59 = vpop.f32.mrb[13].mxu1 }
  0xf7   :  { %v824_v36 = vadd.f32 %v823_v46, %v223_v35  ;;  %v2565_v34 = vpop.f32.mrb[14].mxu0  ;;  %v2601_v5 = vpop.f32.mrb[14].mxu1  ;;  %v968_v40 = vadd.f32 %v967_v59, %v3170_v47 }
  0xf8   :  { %3853 = vst [vmem:[#allocation11_spill] sm:$0xff] %v3379_v18  ;;  %v979_v60 = vadd.f32 %v2601_v5, %v3212_v0  ;;  %v233_v28 = vpop.permute.xlu0 %232  ;;  %v238_v27 = vpop.permute.xlu1 %237  ;;  %v1080_v44 = vmax.f32 %v976_v13, 0.0 }
  0xf9   :  { %v832_v37 = vadd.f32 %v2564_v62, %v233_v28  ;;  %v835_v10 = vadd.f32 %v2565_v34, %v238_v27  ;;  %v826_v12 = vpop.f32.mrb[15].mxu0  ;;  %v970_v29 = vpop.f32.mrb[15].mxu1  ;;  %v1042_v54 = vmax.f32 %v824_v36, 0.0  ;;  %v1078_v18 = vmax.f32 %v968_v40, 0.0 }
  0xfa   :  { %v1081_v14 = vmax.f32 %v979_v60, 0.0  ;;  %v827_v61 = vadd.f32 %v826_v12, %v3348_v42  ;;  %v971_v63 = vadd.f32 %v970_v29, %v3172_v48 }
  0xfb   :  { %v1044_v35 = vmax.f32 %v832_v37, 0.0  ;;  %v1045_v46 = vmax.f32 %v835_v10, 0.0 }
  0xfc   :  { %v3386_v6 = vpack.c.bf16 %v1081_v14, %v1080_v44  ;;  %v1043_v47 = vmax.f32 %v827_v61, 0.0  ;;  %v1079_v0 = vmax.f32 %v971_v63, 0.0  ;;  %v3388_v59 = vpop.permute.xlu0 %472  ;;  %v3390_v62 = vpop.permute.xlu1 %477 }
  0xfd   :  { %v3392_v34 = vpack.c.bf16 %v1045_v46, %v1044_v35  ;;  %v2568_v13 = vpop.f32.mrb[16].mxu0  ;;  %v2604_v5 = vpop.f32.mrb[16].mxu1 }
  0xfe   :  { %v3394_v60 = vpack.c.bf16 %v1043_v47, %v1042_v54  ;;  %v1182_v42 = vpack.c.bf16 %v1079_v0, %v1078_v18  ;;  %v848_v48 = vadd.f32 %v2568_v13, %v3190_v55  ;;  %v992_v36 = vadd.f32 %v2604_v5, %v3291_v32  ;;  %v839_v40 = vpop.f32.mrb[17].mxu0  ;;  %v983_v28 = vpop.f32.mrb[17].mxu1 }
  0xff   :  { %v840_v27 = vadd.f32 %v839_v40, %v3150_v39  ;;  %v984_v37 = vadd.f32 %v983_v28, %v3253_v16  ;;  %v2569_v10 = vpop.f32.mrb[18].mxu0  ;;  %v2605_v12 = vpop.f32.mrb[18].mxu1 }
 0x100   :  { %v851_v29 = vadd.f32 %v2569_v10, %v3192_v56  ;;  %v995_v44 = vadd.f32 %v2605_v12, %v3293_v33  ;;  %2414 = vmatprep.subr.bf16.mxu0 %v1182_v42  ;;  %v393_v14 = vpop.permute.xlu0 %392  ;;  %v398_v61 = vpop.permute.xlu1 %397  ;;  %v1048_v18 = vmax.f32 %v848_v48, 0.0  ;;  %v1084_v63 = vmax.f32 %v992_v36, 0.0 }
 0x101   :  { %v960_v55 = vadd.f32 %v3359_v21, %v393_v14  ;;  %v963_v32 = vadd.f32 %v3366_v31, %v398_v61  ;;  %v842_v54 = vpop.f32.mrb[19].mxu0  ;;  %v986_v35 = vpop.f32.mrb[19].mxu1  ;;  %v1046_v56 = vmax.f32 %v840_v27, 0.0  ;;  %v1082_v0 = vmax.f32 %v984_v37, 0.0 }
 0x102   :  { %v1049_v39 = vmax.f32 %v851_v29, 0.0  ;;  %v1085_v46 = vmax.f32 %v995_v44, 0.0  ;;  %v843_v16 = vadd.f32 %v842_v54, %v3160_v43  ;;  %v987_v47 = vadd.f32 %v986_v35, %v3255_v17 }
 0x103   :  { %v1076_v33 = vmax.f32 %v960_v55, 0.0  ;;  %v1077_v13 = vmax.f32 %v963_v32, 0.0 }
 0x104   :  { %v1167_v5 = vpack.c.bf16 %v1049_v39, %v1048_v18  ;;  %v3406_v42 = vpack.c.bf16 %v1085_v46, %v1084_v63  ;;  %v1047_v48 = vmax.f32 %v843_v16, 0.0  ;;  %v1083_v36 = vmax.f32 %v987_v47, 0.0 }
 0x105   :  { %v3408_v21 = vpack.c.bf16 %v1077_v13, %v1076_v33  ;;  %v2572_v31 = vpop.f32.mrb[20].mxu0  ;;  %v2608_v40 = vpop.f32.mrb[20].mxu1 }
 0x106   :  { %v1166_v28 = vpack.c.bf16 %v1047_v48, %v1046_v56  ;;  %v3410_v10 = vpack.c.bf16 %v1083_v36, %v1082_v0  ;;  %v864_v43 = vadd.f32 %v2572_v31, %v3271_v24  ;;  %v1008_v17 = vadd.f32 %v2608_v40, %v3324_v1  ;;  %v855_v27 = vpop.f32.mrb[21].mxu0  ;;  %v999_v37 = vpop.f32.mrb[21].mxu1 }
 0x107   :  { %v856_v12 = vadd.f32 %v855_v27, %v3230_v7  ;;  %v1000_v29 = vadd.f32 %v999_v37, %v3312_v49  ;;  %v2573_v44 = vpop.f32.mrb[22].mxu0  ;;  %v2609_v14 = vpop.f32.mrb[22].mxu1 }
 0x108   :  { %v867_v61 = vadd.f32 %v2573_v44, %v3273_v25  ;;  %v1011_v18 = vadd.f32 %v2609_v14, %v3326_v2  ;;  %2302 = vmatprep.subr.bf16.mxu1 %v1166_v28  ;;  %v1052_v63 = vmax.f32 %v864_v43, 0.0  ;;  %v1088_v55 = vmax.f32 %v1008_v17, 0.0  ;;  %v858_v32 = vpop.f32.mrb[23].mxu0  ;;  %v1002_v54 = vpop.f32.mrb[23].mxu1 }
 0x109   :  { %2303 = vmatpush3.bf16.msra.mxu1 %v3341_v19  ;;  %v859_v35 = vadd.f32 %v858_v32, %v3232_v8  ;;  %v1003_v7 = vadd.f32 %v1002_v54, %v3314_v50  ;;  %v1050_v49 = vmax.f32 %v856_v12, 0.0  ;;  %v1086_v39 = vmax.f32 %v1000_v29, 0.0 }
 0x10a   :  { %v1053_v24 = vmax.f32 %v867_v61, 0.0  ;;  %v1089_v1 = vmax.f32 %v1011_v18, 0.0  ;;  %2304 = vmatprep.subr.bf16.mxu1 %v1167_v5 }
 0x10b   :  { %v1051_v2 = vmax.f32 %v859_v35, 0.0  ;;  %v1087_v16 = vmax.f32 %v1003_v7, 0.0 }
 0x10c   :  { %v1169_v46 = vpack.c.bf16 %v1053_v24, %v1052_v63  ;;  %v3421_v25 = vpack.c.bf16 %v1089_v1, %v1088_v55 }
 0x10d   :  { %2305 = vmatpush3.bf16.msra.mxu1 %v3333_v20  ;;  %v2576_v47 = vpop.f32.mrb[24].mxu0  ;;  %v2612_v56 = vpop.f32.mrb[24].mxu1  ;;  %v1168_v0 = vpack.c.bf16 %v1051_v2, %v1050_v49  ;;  %v3424_v19 = vpack.c.bf16 %v1087_v16, %v1086_v39  ;;  %v3854_v2 = vld [vmem:[#allocation7_spill] sm:$0xff] }
 0x10e   :  { %v880_v33 = vadd.f32 %v2576_v47, %v3316_v57  ;;  %v1024_v8 = vadd.f32 %v2612_v56, %v3388_v59  ;;  %v871_v50 = vpop.f32.mrb[25].mxu0  ;;  %v1015_v13 = vpop.f32.mrb[25].mxu1  ;;  %v3855_v56 = vld [vmem:[#allocation6_spill] sm:$0xff] }
 0x10f   :  { %v872_v5 = vadd.f32 %v871_v50, %v3301_v38  ;;  %v1016_v48 = vadd.f32 %v1015_v13, %v3355_v15  ;;  %v2577_v36 = vpop.f32.mrb[26].mxu0  ;;  %v2613_v31 = vpop.f32.mrb[26].mxu1  ;;  %2306 = vmatprep.subr.bf16.mxu1 %v1168_v0  ;;  %v3856_v13 = vld [vmem:[#allocation8_spill] sm:$0xff] }
 0x110   :  { %v883_v40 = vadd.f32 %v2577_v36, %v3318_v58  ;;  %v1027_v20 = vadd.f32 %v2613_v31, %v3390_v62  ;;  %v1056_v28 = vmax.f32 %v880_v33, 0.0  ;;  %v1092_v43 = vmax.f32 %v1024_v8, 0.0  ;;  %v874_v17 = vpop.f32.mrb[27].mxu0  ;;  %v1018_v27 = vpop.f32.mrb[27].mxu1  ;;  %v2671_v36 = vld [vmem:[%s3843_s3 + $0x80] ss:$16 sps:$4 sm:$0xff]  }
 0x111   :  { %2307 = vmatpush3.bf16.msra.mxu1 %v3361_v23  ;;  %v875_v37 = vadd.f32 %v874_v17, %v3303_v41  ;;  %v1019_v38 = vadd.f32 %v1018_v27, %v3357_v52  ;;  %v1054_v15 = vmax.f32 %v872_v5, 0.0  ;;  %v1090_v12 = vmax.f32 %v1016_v48, 0.0  ;;  %v3857_v5 = vld [vmem:[#allocation10_spill] sm:$0xff]  ;;  %v3859_v48 = vld [vmem:[#allocation11_spill] sm:$0xff] }
 0x112   :  { %v1057_v57 = vmax.f32 %v883_v40, 0.0  ;;  %v1093_v59 = vmax.f32 %v1027_v20, 0.0  ;;  %2308 = vmatprep.subr.bf16.mxu1 %v1169_v46  ;;  %v2672_v31 = vld [vmem:[%s3843_s3 + $0x2c] ss:$16 sps:$4 sm:$0xff]   ;;  %v2674_v40 = vld [vmem:[%s3843_s3 + $0xa4] ss:$16 sps:$4 sm:$0xff]  }
 0x113   :  { %v1055_v62 = vmax.f32 %v875_v37, 0.0  ;;  %v1091_v44 = vmax.f32 %v1019_v38, 0.0  ;;  %v2677_v20 = vld [vmem:[%s3843_s3 + $0xa0] ss:$16 sps:$4 sm:$0xff]   ;;  %v2682_v17 = vld [vmem:[%s3843_s3 + $0x48] ss:$16 sps:$4 sm:$0xff]  }
 0x114   :  { %v1171_v29 = vpack.c.bf16 %v1057_v57, %v1056_v28  ;;  %v3435_v58 = vpack.c.bf16 %v1093_v59, %v1092_v43  ;;  %v2678_v28 = vld [vmem:[%s3843_s3 + $0x4c] ss:$16 sps:$4 sm:$0xff]   ;;  %v2680_v43 = vld [vmem:[%s3843_s3 + $0xc4] ss:$16 sps:$4 sm:$0xff]   ;;  %v2683_v27 = vld [vmem:[%s3843_s3 + $0xc0] ss:$16 sps:$4 sm:$0xff]  }
 0x115   :  { %2309 = vmatpush3.bf16.msra.mxu1 %v3351_v53  ;;  %v2580_v14 = vpop.f32.mrb[28].mxu0  ;;  %v1170_v61 = vpack.c.bf16 %v1055_v62, %v1054_v15  ;;  %v1188_v18 = vpack.c.bf16 %v1091_v44, %v1090_v12  ;;  %v2684_v57 = vld [vmem:[%s3843_s3 + $0x6c] ss:$16 sps:$4 sm:$0xff]   ;;  %v2686_v59 = vld [vmem:[%s3843_s3 + $0xe4] ss:$16 sps:$4 sm:$0xff]  }
 0x116   :  { %v896_v23 = vadd.f32 %v2580_v14, %v3373_v26  ;;  %v887_v63 = vpop.f32.mrb[29].mxu0  ;;  %v2688_v37 = vld [vmem:[%s3843_s3 + $0x68] ss:$16 sps:$4 sm:$0xff]   ;;  %v2689_v38 = vld [vmem:[%s3843_s3 + $0xe0] ss:$16 sps:$4 sm:$0xff]  }
 0x117   :  { %v2581_v55 = vpop.f32.mrb[30].mxu0  ;;  %v888_v41 = vadd.f32 %v887_v63, %v3337_v11  ;;  %2310 = vmatprep.subr.bf16.mxu1 %v1170_v61  ;;  %v2690_v15 = vld [vmem:[%s3843_s3 + $0x8c] ss:$16 sps:$4 sm:$0xff]   ;;  %v2692_v12 = vld [vmem:[%s3843_s3 + $0x104] ss:$16 sps:$4 sm:$0xff]  }
 0x118   :  { %v899_v52 = vadd.f32 %v2581_v55, %v3375_v45  ;;  %v890_v32 = vpop.f32.mrb[31].mxu0  ;;  %v1060_v54 = vmax.f32 %v896_v23, 0.0  ;;  %v2696_v62 = vld [vmem:[%s3843_s3 + $0xac] ss:$16 sps:$4 sm:$0xff]   ;;  %v2698_v44 = vld [vmem:[%s3843_s3 + $0x124] ss:$16 sps:$4 sm:$0xff]  }
 0x119   :  { %2311 = vmatpush3.bf16.msra.mxu1 %v3377_v4  ;;  %v891_v1 = vadd.f32 %v890_v32, %v3339_v9  ;;  %v1058_v53 = vmax.f32 %v888_v41, 0.0  ;;  %v2700_v14 = vld [vmem:[%s3843_s3 + $0xa8] ss:$16 sps:$4 sm:$0xff]   ;;  %v2701_v61 = vld [vmem:[%s3843_s3 + $0x120] ss:$16 sps:$4 sm:$0xff]  }
 0x11a   :  { %v1061_v24 = vmax.f32 %v899_v52, 0.0  ;;  %2312 = vmatprep.subr.bf16.mxu1 %v1171_v29  ;;  %v2694_v29 = vld [vmem:[%s3843_s3 + $0x88] ss:$16 sps:$4 sm:$0xff]   ;;  %v2704_v23 = vld [vmem:[%s3843_s3 + $0x144] ss:$16 sps:$4 sm:$0xff]  }
 0x11b   :  { %v1059_v7 = vmax.f32 %v891_v1, 0.0  ;;  %v2706_v63 = vld [vmem:[%s3843_s3 + $0xc8] ss:$16 sps:$4 sm:$0xff]   ;;  %v2707_v55 = vld [vmem:[%s3843_s3 + $0x140] ss:$16 sps:$4 sm:$0xff]  }
 0x11c   :  { %v1173_v35 = vpack.c.bf16 %v1061_v24, %v1060_v54  ;;  %v2708_v41 = vld [vmem:[%s3843_s3 + $0xec] ss:$16 sps:$4 sm:$0xff]   ;;  %v2710_v52 = vld [vmem:[%s3843_s3 + $0x164] ss:$16 sps:$4 sm:$0xff]   ;;  %v2712_v32 = vld [vmem:[%s3843_s3 + $0xe8] ss:$16 sps:$4 sm:$0xff]  }
 0x11d   :  { %2313 = vmatpush3.bf16.msra.mxu1 %v3371_v30  ;;  %v2584_v26 = vpop.f32.mrb[32].mxu0  ;;  %v1172_v49 = vpack.c.bf16 %v1059_v7, %v1058_v53  ;;  %v2713_v54 = vld [vmem:[%s3843_s3 + $0x160] ss:$16 sps:$4 sm:$0xff]   ;;  %v2714_v24 = vld [vmem:[%s3843_s3 + $0x10c] ss:$16 sps:$4 sm:$0xff]  }
 0x11e   :  { %v912_v11 = vadd.f32 %v2584_v26, %v3220_v3  ;;  %v903_v39 = vpop.f32.mrb[33].mxu0  ;;  %v2654_v3 = vld [vmem:[%s3843_s3] ss:$16 sps:$4 sm:$0xff]   ;;  %v2716_v1 = vld [vmem:[%s3843_s3 + $0x184] ss:$16 sps:$4 sm:$0xff]  }
 0x11f   :  { %v2585_v45 = vpop.f32.mrb[34].mxu0  ;;  %v904_v46 = vadd.f32 %v903_v39, %v3180_v51  ;;  %2314 = vmatprep.subr.bf16.mxu1 %v1172_v49  ;;  %v2657_v51 = vld [vmem:[%s3843_s3 + $0x24] ss:$16 sps:$4 sm:$0xff]   ;;  %v2718_v53 = vld [vmem:[%s3843_s3 + $0x108] ss:$16 sps:$4 sm:$0xff]  }
 0x120   :  { %v915_v4 = vadd.f32 %v2585_v45, %v3854_v2  ;;  %v906_v16 = vpop.f32.mrb[35].mxu0  ;;  %v1064_v9 = vmax.f32 %v912_v11, 0.0  ;;  %v2720_v7 = vld [vmem:[%s3843_s3 + $0x12c] ss:$16 sps:$4 sm:$0xff]   ;;  %v2722_v26 = vld [vmem:[%s3843_s3 + $0x1a4] ss:$16 sps:$4 sm:$0xff]  }
 0x121   :  { %2315 = vmatpush3.bf16.msra.mxu1 %v3394_v60  ;;  %v907_v0 = vadd.f32 %v906_v16, %v3855_v56  ;;  %v1062_v30 = vmax.f32 %v904_v46, 0.0  ;;  %v2659_v60 = vld [vmem:[%s3843_s3 + $0x20] ss:$16 sps:$4 sm:$0xff]   ;;  %v2724_v49 = vld [vmem:[%s3843_s3 + $0x128] ss:$16 sps:$4 sm:$0xff]  }
 0x122   :  { %v1065_v47 = vmax.f32 %v915_v4, 0.0  ;;  %2316 = vmatprep.subr.bf16.mxu1 %v1173_v35  ;;  %v2719_v35 = vld [vmem:[%s3843_s3 + $0x180] ss:$16 sps:$4 sm:$0xff]   ;;  %v2726_v39 = vld [vmem:[%s3843_s3 + $0x14c] ss:$16 sps:$4 sm:$0xff]  }
 0x123   :  { %v1063_v8 = vmax.f32 %v907_v0, 0.0  ;;  %v2725_v11 = vld [vmem:[%s3843_s3 + $0x1a0] ss:$16 sps:$4 sm:$0xff]   ;;  %v2728_v45 = vld [vmem:[%s3843_s3 + $0x1c4] ss:$16 sps:$4 sm:$0xff]  }
 0x124   :  { %v1175_v33 = vpack.c.bf16 %v1065_v47, %v1064_v9  ;;  %v2730_v46 = vld [vmem:[%s3843_s3 + $0x148] ss:$16 sps:$4 sm:$0xff]   ;;  %v2731_v2 = vld [vmem:[%s3843_s3 + $0x1c0] ss:$16 sps:$4 sm:$0xff]   ;;  %v2732_v4 = vld [vmem:[%s3843_s3 + $0x16c] ss:$16 sps:$4 sm:$0xff]  }
 0x125   :  { %2317 = vmatpush3.bf16.msra.mxu1 %v3392_v34  ;;  %v1174_v50 = vpack.c.bf16 %v1063_v8, %v1062_v30  ;;  %v2660_v34 = vld [vmem:[%s3843_s3 + $0x44] ss:$16 sps:$4 sm:$0xff]   ;;  %v2736_v9 = vld [vmem:[%s3843_s3 + $0x168] ss:$16 sps:$4 sm:$0xff]   ;;  %v2737_v47 = vld [vmem:[%s3843_s3 + $0x1e0] ss:$16 sps:$4 sm:$0xff]  }
 0x126   :  { %v2734_v16 = vld [vmem:[%s3843_s3 + $0x1e4] ss:$16 sps:$4 sm:$0xff]   ;;  %v2738_v56 = vld [vmem:[%s3843_s3 + $0x18c] ss:$16 sps:$4 sm:$0xff]   ;;  %v2740_v0 = vld [vmem:[%s3843_s3 + $0x188] ss:$16 sps:$4 sm:$0xff]  }
 0x127   :  { %2415 = vmatpush3.bf16.msra.mxu0 %v1174_v50  ;;  %v2741_v30 = vld [vmem:[%s3843_s3 + $0x1ac] ss:$16 sps:$4 sm:$0xff]   ;;  %v2749_v50 = vld [vmem:[%s3843_s3 + $0x1e8] ss:$16 sps:$4 sm:$0xff]  }
 0x128   :  { %1735 = vmatmul.mubr.bf16.vlgmr.msra.gmra.mrb[28].mxu1 %v2654_v3  ;;  %2416 = vmatprep.subr.bf16.mxu0 %v3386_v6  ;;  %v2662_v6 = vld [vmem:[%s3843_s3 + $0x40] ss:$16 sps:$4 sm:$0xff]   ;;  %v2744_v8 = vld [vmem:[%s3843_s3 + $0x1cc] ss:$16 sps:$4 sm:$0xff]   ;;  %v2746_v3 = vld [vmem:[%s3843_s3 + $0x1c8] ss:$16 sps:$4 sm:$0xff]  }
 0x129   :  { %1742 = vmatprep.mubr.bf16.mxu1 %v2657_v51  ;;  %v2747_v51 = vld [vmem:[%s3843_s3 + $0x1ec] ss:$16 sps:$4 sm:$0xff]  }
 0x12b   :  { %2417 = vmatpush3.bf16.msra.mxu0 %v1175_v33  ;;  %v2743_v33 = vld [vmem:[%s3843_s3 + $0x1a8] ss:$16 sps:$4 sm:$0xff]  }
 0x12c   :  { %2418 = vmatprep.subr.bf16.mxu0 %v3410_v10  ;;  %v2663_v10 = vld [vmem:[%s3843_s3 + $0x64] ss:$16 sps:$4 sm:$0xff]  }
 0x12f   :  { %2419 = vmatpush3.bf16.msra.mxu0 %v3343_v22  ;;  %v3858_v22 = vld [vmem:[#allocation9_spill] sm:$0xff] }
 0x130   :  { %1743 = vmatmul.mubr.bf16.gmra.mrb[32].mxu1 %v2659_v60  ;;  %2420 = vmatprep.subr.bf16.mxu0 %v3406_v42  ;;  %v2665_v42 = vld [vmem:[%s3843_s3 + $0x60] ss:$16 sps:$4 sm:$0xff]   ;;  %v3648_v60 = vpop.permute.xlu0 %1304 }
 0x131   :  { %1750 = vmatprep.mubr.bf16.mxu1 %v2660_v34  ;;  %v3650_v34 = vpop.permute.xlu1 %1309 }
 0x133   :  { %2421 = vmatpush3.bf16.msra.mxu0 %v3856_v13 }
 0x134   :  { %2422 = vmatprep.subr.bf16.mxu0 %v3424_v19  ;;  %v2669_v19 = vld [vmem:[%s3843_s3 + $0x84] ss:$16 sps:$4 sm:$0xff]   ;;  %v1225_v13 = vpop.permute.xlu0 %1224 }
 0x137   :  { %2423 = vmatpush3.bf16.msra.mxu0 %v3857_v5 }
 0x138   :  { %1751 = vmatmul.mubr.bf16.gmra.mrb[36].mxu1 %v2662_v6  ;;  %2424 = vmatprep.subr.bf16.mxu0 %v3421_v25  ;;  %v2666_v25 = vld [vmem:[%s3843_s3 + $0x8] ss:$16 sps:$4 sm:$0xff]   ;;  %v1230_v6 = vpop.permute.xlu1 %1229 }
 0x139   :  { %1758 = vmatprep.mubr.bf16.mxu1 %v2663_v10  ;;  %v3652_v10 = vpop.permute.xlu0 %1314 }
 0x13b   :  { %2425 = vmatpush3.bf16.msra.mxu0 %v3858_v22 }
 0x13c   :  { %2426 = vmatprep.subr.bf16.mxu0 %v1188_v18  ;;  %v2702_v18 = vld [vmem:[%s3843_s3 + $0xcc] ss:$16 sps:$4 sm:$0xff]   ;;  %v3654_v5 = vpop.permute.xlu1 %1319 }
 0x13d   :  { %v1235_v22 = vpop.permute.xlu0 %1234 }
 0x13f   :  { %2427 = vmatpush3.bf16.msra.mxu0 %v3859_v48 }
 0x140   :  { %1759 = vmatmul.mubr.bf16.gmra.mrb[40].mxu1 %v2665_v42  ;;  %2428 = vmatprep.subr.bf16.mxu0 %v3435_v58  ;;  %v2695_v58 = vld [vmem:[%s3843_s3 + $0x100] ss:$16 sps:$4 sm:$0xff]  }
 0x141   :  { %1766 = vmatprep.mubr.bf16.mxu1 %v2669_v19  ;;  %v3656_v19 = vpop.permute.xlu1 %1239 }
 0x143   :  { %2429 = vmatpush3.bf16.msra.mxu0 %v3408_v21  ;;  %v2676_v21 = vld [vmem:[%s3843_s3 + $0x28] ss:$16 sps:$4 sm:$0xff]  }
 0x146   :  { %1896 = vmatmul.mubr.bf16.vlgmr.msra.gmra.mrb[36].mxu0 %v2666_v25 }
 0x147   :  { %1903 = vmatprep.mubr.bf16.mxu0 %v2672_v31 }
 0x148   :  { %1767 = vmatmul.mubr.bf16.gmra.mrb[44].mxu1 %v2671_v36 }
 0x149   :  { %1774 = vmatprep.mubr.bf16.mxu1 %v2674_v40 }
 0x14e   :  { %1904 = vmatmul.mubr.bf16.gmra.mrb[40].mxu0 %v2676_v21  ;;  %v3658_v21 = vpop.permute.xlu0 %1324 }
 0x14f   :  { %1911 = vmatprep.mubr.bf16.mxu0 %v2678_v28 }
 0x150   :  { %1775 = vmatmul.mubr.bf16.gmra.mrb[48].mxu1 %v2677_v20  ;;  %v3660_v20 = vpop.permute.xlu1 %1329 }
 0x151   :  { %1782 = vmatprep.mubr.bf16.mxu1 %v2680_v43 }
 0x156   :  { %1912 = vmatmul.mubr.bf16.gmra.mrb[44].mxu0 %v2682_v17 }
 0x157   :  { %1919 = vmatprep.mubr.bf16.mxu0 %v2684_v57 }
 0x158   :  { %1783 = vmatmul.mubr.bf16.gmra.mrb[52].mxu1 %v2683_v27 }
 0x159   :  { %1790 = vmatprep.mubr.bf16.mxu1 %v2686_v59  ;;  %v3662_v59 = vpop.permute.xlu0 %1244 }
 0x15e   :  { %1920 = vmatmul.mubr.bf16.gmra.mrb[48].mxu0 %v2688_v37 }
 0x15f   :  { %1927 = vmatprep.mubr.bf16.mxu0 %v2690_v15 }
 0x160   :  { %1791 = vmatmul.mubr.bf16.gmra.mrb[56].mxu1 %v2689_v38  ;;  %v3664_v38 = vpop.permute.xlu1 %1249 }
 0x161   :  { %1798 = vmatprep.mubr.bf16.mxu1 %v2692_v12 }
 0x166   :  { %1928 = vmatmul.mubr.bf16.gmra.mrb[52].mxu0 %v2694_v29  ;;  %v3666_v29 = vpop.permute.xlu0 %1334 }
 0x167   :  { %1935 = vmatprep.mubr.bf16.mxu0 %v2696_v62 }
 0x168   :  { %1799 = vmatmul.mubr.bf16.gmra.mrb[60].mxu1 %v2695_v58 }
 0x169   :  { %1806 = vmatprep.mubr.bf16.mxu1 %v2698_v44  ;;  %v3668_v44 = vpop.permute.xlu1 %1339 }
 0x16e   :  { %1936 = vmatmul.mubr.bf16.gmra.mrb[56].mxu0 %v2700_v14 }
 0x16f   :  { %1943 = vmatprep.mubr.bf16.mxu0 %v2702_v18  ;;  %v3672_v18 = vpop.permute.xlu0 %1254 }
 0x170   :  { %1807 = vmatmul.mubr.bf16.gmra.mrb[64].mxu1 %v2701_v61 }
 0x171   :  { %1814 = vmatprep.mubr.bf16.mxu1 %v2704_v23 }
 0x176   :  { %1944 = vmatmul.mubr.bf16.gmra.mrb[60].mxu0 %v2706_v63  ;;  %v3674_v63 = vpop.permute.xlu1 %1259 }
 0x177   :  { %1951 = vmatprep.mubr.bf16.mxu0 %v2708_v41 }
 0x178   :  { %1815 = vmatmul.mubr.bf16.gmra.mrb[68].mxu1 %v2707_v55 }
 0x179   :  { %1822 = vmatprep.mubr.bf16.mxu1 %v2710_v52 }
 0x17e   :  { %1952 = vmatmul.mubr.bf16.gmra.mrb[64].mxu0 %v2712_v32 }
 0x17f   :  { %1959 = vmatprep.mubr.bf16.mxu0 %v2714_v24  ;;  %v3680_v24 = vpop.permute.xlu0 %1344 }
 0x180   :  { %1823 = vmatmul.mubr.bf16.gmra.mrb[72].mxu1 %v2713_v54 }
 0x181   :  { %1830 = vmatprep.mubr.bf16.mxu1 %v2716_v1  ;;  %v3682_v1 = vpop.permute.xlu1 %1349 }
 0x186   :  { %1960 = vmatmul.mubr.bf16.gmra.mrb[68].mxu0 %v2718_v53 }
 0x187   :  { %1967 = vmatprep.mubr.bf16.mxu0 %v2720_v7 }
 0x188   :  { %1831 = vmatmul.mubr.bf16.gmra.mrb[76].mxu1 %v2719_v35 }
 0x189   :  { %1838 = vmatprep.mubr.bf16.mxu1 %v2722_v26 }
 0x18e   :  { %1968 = vmatmul.mubr.bf16.gmra.mrb[72].mxu0 %v2724_v49 }
 0x18f   :  { %1975 = vmatprep.mubr.bf16.mxu0 %v2726_v39 }
 0x190   :  { %1839 = vmatmul.mubr.bf16.gmra.mrb[80].mxu1 %v2725_v11 }
 0x191   :  { %1846 = vmatprep.mubr.bf16.mxu1 %v2728_v45 }
 0x196   :  { %1976 = vmatmul.mubr.bf16.gmra.mrb[76].mxu0 %v2730_v46 }
 0x197   :  { %1983 = vmatprep.mubr.bf16.mxu0 %v2732_v4 }
 0x198   :  { %1847 = vmatmul.mubr.bf16.gmra.mrb[84].mxu1 %v2731_v2 }
 0x199   :  { %1854 = vmatprep.mubr.bf16.mxu1 %v2734_v16 }
 0x19e   :  { %1984 = vmatmul.mubr.bf16.gmra.mrb[80].mxu0 %v2736_v9 }
 0x19f   :  { %1991 = vmatprep.mubr.bf16.mxu0 %v2738_v56  ;;  %v3689_v56 = vld [vmem:[%s3845_s5] sm:$0xff] }
 0x1a0   :  { %1855 = vmatmul.mubr.bf16.gmra.mrb[88].mxu1 %v2737_v47 }
 0x1a6   :  { %1992 = vmatmul.mubr.bf16.gmra.mrb[84].mxu0 %v2740_v0 }
 0x1a7   :  { %1999 = vmatprep.mubr.bf16.mxu0 %v2741_v30  ;;  %v2268_v30 = vcombine.high %v3689_v56, %v3689_v56 }
 0x1a9   :  { %2112 = vmatprep.mubr.bf16.mxu1 %v2268_v30 }
 0x1ae   :  { %2000 = vmatmul.mubr.bf16.gmra.mrb[88].mxu0 %v2743_v33 }
 0x1af   :  { %2007 = vmatprep.mubr.bf16.mxu0 %v2744_v8  ;;  %v3695_v8 = vpop.permute.xlu0 %1264 }
 0x1b6   :  { %2008 = vmatmul.mubr.bf16.gmra.mrb[92].mxu0 %v2746_v3  ;;  %v3697_v3 = vpop.permute.xlu1 %1269 }
 0x1b7   :  { %2015 = vmatprep.mubr.bf16.mxu0 %v2747_v51 }
 0x1be   :  { %2016 = vmatmul.mubr.bf16.gmra.mrb[96].mxu0 %v2749_v50 }
 0x1fb   :  { %v2318_v42 = vpop.f32.mrb[28].mxu1 }
 0x1fc   :  { %v2319_v48 = vpop.f32.mrb[29].mxu1 }
 0x1fd   :  { %v2320_v25 = vadd.f32 %v2319_v48, %v2318_v42  ;;  %v2321_v36 = vpop.f32.mrb[30].mxu1 }
 0x1fe   :  { %v2322_v31 = vpop.f32.mrb[31].mxu1 }
 0x1ff   :  { %v2323_v40 = vadd.f32 %v2322_v31, %v2321_v36  ;;  %v1737_v26 = vadd.f32 %v2320_v25, %v1225_v13 }
 0x201   :  { %v1740_v4 = vadd.f32 %v2323_v40, %v1230_v6 }
 0x203   :  { %v2324_v28 = vpop.f32.mrb[32].mxu1 }
 0x204   :  { %v2325_v43 = vpop.f32.mrb[33].mxu1 }
 0x205   :  { %v2326_v17 = vadd.f32 %v2325_v43, %v2324_v28  ;;  %v2327_v27 = vpop.f32.mrb[34].mxu1 }
 0x206   :  { %v2328_v57 = vpop.f32.mrb[35].mxu1 }
 0x207   :  { %v2329_v37 = vadd.f32 %v2328_v57, %v2327_v27  ;;  %v1745_v48 = vadd.f32 %v2326_v17, %v1235_v22  ;;  %v3708_v22 = vpop.permute.xlu1 %1359 }
 0x209   :  { %v1748_v57 = vadd.f32 %v2329_v37, %v3656_v19 }
 0x20b   :  { %v2330_v15 = vpop.f32.mrb[36].mxu1 }
 0x20c   :  { %v2331_v12 = vpop.f32.mrb[37].mxu1 }
 0x20d   :  { %v2332_v58 = vadd.f32 %v2331_v12, %v2330_v15  ;;  %v2333_v62 = vpop.f32.mrb[38].mxu1 }
 0x20e   :  { %v2334_v14 = vpop.f32.mrb[39].mxu1 }
 0x20f   :  { %v3670_v61 = vadd.f32 %v2334_v14, %v2333_v62 }
 0x213   :  { %v2336_v23 = vpop.f32.mrb[40].mxu1 }
 0x214   :  { %v2337_v55 = vpop.f32.mrb[41].mxu1 }
 0x215   :  { %v3676_v41 = vadd.f32 %v2337_v55, %v2336_v23  ;;  %v2339_v52 = vpop.f32.mrb[42].mxu1  ;;  %v3706_v55 = vpop.permute.xlu0 %1354 }
 0x216   :  { %v2340_v32 = vpop.f32.mrb[43].mxu1 }
 0x217   :  { %v3678_v54 = vadd.f32 %v2340_v32, %v2339_v52 }
 0x219   :  { %v2430_v53 = vpop.f32.mrb[36].mxu0 }
 0x21a   :  { %v2431_v7 = vpop.f32.mrb[37].mxu0 }
 0x21b   :  { %v2342_v35 = vpop.f32.mrb[44].mxu1  ;;  %v2432_v49 = vadd.f32 %v2431_v7, %v2430_v53  ;;  %v2433_v39 = vpop.f32.mrb[38].mxu0  ;;  %v1753_v7 = vadd.f32 %v2332_v58, %v3662_v59 }
 0x21c   :  { %v2343_v11 = vpop.f32.mrb[45].mxu1  ;;  %v2434_v2 = vpop.f32.mrb[39].mxu0 }
 0x21d   :  { %v3684_v45 = vadd.f32 %v2343_v11, %v2342_v35  ;;  %v2345_v46 = vpop.f32.mrb[46].mxu1  ;;  %v1898_v16 = vadd.f32 %v2432_v49, %v1737_v26  ;;  %v2435_v9 = vadd.f32 %v2434_v2, %v2433_v39  ;;  %v1756_v2 = vadd.f32 %v3670_v61, %v3664_v38  ;;  %v1280_v59 = vpop.permute.xlu1 %1279 }
 0x21e   :  { %v2346_v47 = vpop.f32.mrb[47].mxu1 }
 0x21f   :  { %v3691_v0 = vadd.f32 %v2346_v47, %v2345_v46  ;;  %v1901_v33 = vadd.f32 %v2435_v9, %v1740_v4  ;;  %v2024_v51 = vmax.f32 %v1898_v16, 0.0 }
 0x221   :  { %v2025_v50 = vmax.f32 %v1901_v33, 0.0  ;;  %v2436_v13 = vpop.f32.mrb[40].mxu0  ;;  %v1275_v33 = vpop.permute.xlu0 %1274 }
 0x222   :  { %v2437_v42 = vpop.f32.mrb[41].mxu0 }
 0x223   :  { %v2348_v6 = vpop.f32.mrb[48].mxu1  ;;  %v3699_v25 = vpack.c.bf16 %v2025_v50, %v2024_v51  ;;  %v2438_v36 = vadd.f32 %v2437_v42, %v2436_v13  ;;  %v2439_v40 = vpop.f32.mrb[42].mxu0  ;;  %v1761_v42 = vadd.f32 %v3676_v41, %v3672_v18 }
 0x224   :  { %v2349_v31 = vpop.f32.mrb[49].mxu1  ;;  %v2440_v27 = vpop.f32.mrb[43].mxu0 }
 0x225   :  { %v3701_v28 = vadd.f32 %v2349_v31, %v2348_v6  ;;  %v2351_v43 = vpop.f32.mrb[50].mxu1  ;;  %v1906_v15 = vadd.f32 %v2438_v36, %v1745_v48  ;;  %v2441_v12 = vadd.f32 %v2440_v27, %v2439_v40  ;;  %v1764_v27 = vadd.f32 %v3678_v54, %v3674_v63  ;;  %v3731_v18 = vpop.permute.xlu1 %1369 }
 0x226   :  { %v2352_v62 = vpop.f32.mrb[51].mxu1 }
 0x227   :  { %v3704_v14 = vadd.f32 %v2352_v62, %v2351_v43  ;;  %v1909_v23 = vadd.f32 %v2441_v12, %v1748_v57  ;;  %v2026_v17 = vmax.f32 %v1906_v15, 0.0 }
 0x229   :  { %v2027_v52 = vmax.f32 %v1909_v23, 0.0  ;;  %v2442_v32 = vpop.f32.mrb[44].mxu0 }
 0x22a   :  { %v2443_v35 = vpop.f32.mrb[45].mxu0 }
 0x22b   :  { %v2354_v53 = vpop.f32.mrb[52].mxu1  ;;  %v3711_v26 = vpack.c.bf16 %v2027_v52, %v2026_v17  ;;  %v2444_v19 = vadd.f32 %v2443_v35, %v2442_v32  ;;  %v2445_v49 = vpop.f32.mrb[46].mxu0 }
 0x22c   :  { %v2355_v37 = vpop.f32.mrb[53].mxu1  ;;  %v2446_v46 = vpop.f32.mrb[47].mxu0 }
 0x22d   :  { %v3713_v11 = vadd.f32 %v2355_v37, %v2354_v53  ;;  %v2357_v39 = vpop.f32.mrb[54].mxu1  ;;  %v1914_v4 = vadd.f32 %v2444_v19, %v1753_v7  ;;  %v2447_v16 = vadd.f32 %v2446_v46, %v2445_v49  ;;  %v3729_v17 = vpop.permute.xlu0 %1364  ;;  %v1769_v7 = vadd.f32 %v3684_v45, %v3695_v8 }
 0x22e   :  { %v2358_v9 = vpop.f32.mrb[55].mxu1  ;;  %v1290_v45 = vpop.permute.xlu1 %1289 }
 0x22f   :  { %v3717_v47 = vadd.f32 %v2358_v9, %v2357_v39  ;;  %v1917_v30 = vadd.f32 %v2447_v16, %v1756_v2  ;;  %v2028_v58 = vmax.f32 %v1914_v4, 0.0  ;;  %v1772_v2 = vadd.f32 %v3691_v0, %v3697_v3 }
 0x231   :  { %v2029_v51 = vmax.f32 %v1917_v30, 0.0  ;;  %v2448_v50 = vpop.f32.mrb[48].mxu0 }
 0x232   :  { %v2449_v6 = vpop.f32.mrb[49].mxu0 }
 0x233   :  { %v2360_v13 = vpop.f32.mrb[56].mxu1  ;;  %v3721_v48 = vpack.c.bf16 %v2029_v51, %v2028_v58  ;;  %v2450_v36 = vadd.f32 %v2449_v6, %v2448_v50  ;;  %v2451_v61 = vpop.f32.mrb[50].mxu0 }
 0x234   :  { %v2361_v38 = vpop.f32.mrb[57].mxu1  ;;  %v2452_v43 = vpop.f32.mrb[51].mxu0 }
 0x235   :  { %v3723_v31 = vadd.f32 %v2361_v38, %v2360_v13  ;;  %v2363_v40 = vpop.f32.mrb[58].mxu1  ;;  %v1922_v57 = vadd.f32 %v2450_v36, %v1761_v42  ;;  %v2453_v15 = vadd.f32 %v2452_v43, %v2451_v61  ;;  %v1285_v51 = vpop.permute.xlu0 %1284  ;;  %v1777_v36 = vadd.f32 %v3701_v28, %v1275_v33 }
 0x236   :  { %v2364_v12 = vpop.f32.mrb[59].mxu1  ;;  %v3753_v28 = vpop.permute.xlu1 %1379 }
 0x237   :  { %v3727_v62 = vadd.f32 %v2364_v12, %v2363_v40  ;;  %v1925_v23 = vadd.f32 %v2453_v15, %v1764_v27  ;;  %v2030_v41 = vmax.f32 %v1922_v57, 0.0  ;;  %v1780_v57 = vadd.f32 %v3704_v14, %v1280_v59 }
 0x239   :  { %v2031_v52 = vmax.f32 %v1925_v23, 0.0  ;;  %v2454_v32 = vpop.f32.mrb[52].mxu0 }
 0x23a   :  { %v2455_v35 = vpop.f32.mrb[53].mxu0 }
 0x23b   :  { %v2366_v53 = vpop.f32.mrb[60].mxu1  ;;  %v3735_v19 = vpack.c.bf16 %v2031_v52, %v2030_v41  ;;  %v2456_v63 = vadd.f32 %v2455_v35, %v2454_v32  ;;  %v2457_v37 = vpop.f32.mrb[54].mxu0 }
 0x23c   :  { %v2367_v54 = vpop.f32.mrb[61].mxu1  ;;  %v2458_v46 = vpop.f32.mrb[55].mxu0 }
 0x23d   :  { %v3737_v49 = vadd.f32 %v2367_v54, %v2366_v53  ;;  %v2369_v39 = vpop.f32.mrb[62].mxu1  ;;  %v1930_v4 = vadd.f32 %v2456_v63, %v1769_v7  ;;  %v2459_v16 = vadd.f32 %v2458_v46, %v2457_v37  ;;  %v3751_v32 = vpop.permute.xlu0 %1374  ;;  %v1785_v54 = vadd.f32 %v3713_v11, %v1285_v51 }
 0x23e   :  { %v2370_v9 = vpop.f32.mrb[63].mxu1 }
 0x23f   :  { %v3741_v30 = vadd.f32 %v2370_v9, %v2369_v39  ;;  %v1933_v58 = vadd.f32 %v2459_v16, %v1772_v2  ;;  %v2032_v8 = vmax.f32 %v1930_v4, 0.0  ;;  %v1788_v16 = vadd.f32 %v3717_v47, %v1290_v45 }
 0x241   :  { %v2033_v50 = vmax.f32 %v1933_v58, 0.0  ;;  %v2460_v13 = vpop.f32.mrb[56].mxu0 }
 0x242   :  { %v2461_v42 = vpop.f32.mrb[57].mxu0 }
 0x243   :  { %v2372_v6 = vpop.f32.mrb[64].mxu1  ;;  %v3744_v38 = vpack.c.bf16 %v2033_v50, %v2032_v8  ;;  %v2462_v61 = vadd.f32 %v2461_v42, %v2460_v13  ;;  %v2463_v0 = vpop.f32.mrb[58].mxu0 }
 0x244   :  { %v2373_v40 = vpop.f32.mrb[65].mxu1  ;;  %v2464_v27 = vpop.f32.mrb[59].mxu0 }
 0x245   :  { %v3746_v3 = vadd.f32 %v2373_v40, %v2372_v6  ;;  %v2375_v43 = vpop.f32.mrb[66].mxu1  ;;  %v1938_v15 = vadd.f32 %v2462_v61, %v1777_v36  ;;  %v2465_v12 = vadd.f32 %v2464_v27, %v2463_v0  ;;  %v1295_v6 = vpop.permute.xlu0 %1294 }
 0x246   :  { %v2376_v23 = vpop.f32.mrb[67].mxu1  ;;  %v1300_v42 = vpop.permute.xlu1 %1299  ;;  %v1793_v0 = vadd.f32 %v3723_v31, %v1295_v6 }
 0x247   :  { %v3749_v41 = vadd.f32 %v2376_v23, %v2375_v43  ;;  %v1941_v52 = vadd.f32 %v2465_v12, %v1780_v57  ;;  %v2034_v33 = vmax.f32 %v1938_v15, 0.0  ;;  %v1796_v23 = vadd.f32 %v3727_v62, %v1300_v42 }
 0x249   :  { %v2035_v53 = vmax.f32 %v1941_v52, 0.0  ;;  %v2466_v35 = vpop.f32.mrb[60].mxu0 }
 0x24a   :  { %v2467_v63 = vpop.f32.mrb[61].mxu0 }
 0x24b   :  { %v2378_v7 = vpop.f32.mrb[68].mxu1  ;;  %v3756_v37 = vpack.c.bf16 %v2035_v53, %v2034_v33  ;;  %v2468_v14 = vadd.f32 %v2467_v63, %v2466_v35  ;;  %v2469_v39 = vpop.f32.mrb[62].mxu0 }
 0x24c   :  { %v2379_v59 = vpop.f32.mrb[69].mxu1  ;;  %v2470_v4 = vpop.f32.mrb[63].mxu0 }
 0x24d   :  { %v3758_v46 = vadd.f32 %v2379_v59, %v2378_v7  ;;  %v2381_v2 = vpop.f32.mrb[70].mxu1  ;;  %v1946_v9 = vadd.f32 %v2468_v14, %v1785_v54  ;;  %v2471_v58 = vadd.f32 %v2470_v4, %v2469_v39  ;;  %v1801_v39 = vadd.f32 %v3737_v49, %v3648_v60 }
 0x24e   :  { %v2382_v8 = vpop.f32.mrb[71].mxu1 }
 0x24f   :  { %v3761_v50 = vadd.f32 %v2382_v8, %v2381_v2  ;;  %v1949_v13 = vadd.f32 %v2471_v58, %v1788_v16  ;;  %v2036_v11 = vmax.f32 %v1946_v9, 0.0 }
 0x251   :  { %v2037_v51 = vmax.f32 %v1949_v13, 0.0  ;;  %v2472_v36 = vpop.f32.mrb[64].mxu0  ;;  %v1804_v13 = vadd.f32 %v3741_v30, %v3650_v34 }
 0x252   :  { %v2473_v40 = vpop.f32.mrb[65].mxu0 }
 0x253   :  { %v2384_v61 = vpop.f32.mrb[72].mxu1  ;;  %v3764_v43 = vpack.c.bf16 %v2037_v51, %v2036_v11  ;;  %v2474_v27 = vadd.f32 %v2473_v40, %v2472_v36  ;;  %v2475_v47 = vpop.f32.mrb[66].mxu0 }
 0x254   :  { %v2385_v57 = vpop.f32.mrb[73].mxu1  ;;  %v2476_v12 = vpop.f32.mrb[67].mxu0 }
 0x255   :  { %v3766_v45 = vadd.f32 %v2385_v57, %v2384_v61  ;;  %v2387_v15 = vpop.f32.mrb[74].mxu1  ;;  %v1954_v52 = vadd.f32 %v2474_v27, %v1793_v0  ;;  %v2477_v33 = vadd.f32 %v2476_v12, %v2475_v47  ;;  %v1809_v27 = vadd.f32 %v3746_v3, %v3652_v10 }
 0x256   :  { %v2388_v53 = vpop.f32.mrb[75].mxu1 }
 0x257   :  { %v3769_v35 = vadd.f32 %v2388_v53, %v2387_v15  ;;  %v1957_v7 = vadd.f32 %v2477_v33, %v1796_v23  ;;  %v2038_v63 = vmax.f32 %v1954_v52, 0.0  ;;  %v1812_v52 = vadd.f32 %v3749_v41, %v3654_v5 }
 0x259   :  { %v2039_v54 = vmax.f32 %v1957_v7, 0.0  ;;  %v2478_v31 = vpop.f32.mrb[68].mxu0 }
 0x25a   :  { %v2479_v59 = vpop.f32.mrb[69].mxu0 }
 0x25b   :  { %v2390_v14 = vpop.f32.mrb[76].mxu1  ;;  %v3773_v2 = vpack.c.bf16 %v2039_v54, %v2038_v63  ;;  %v2480_v4 = vadd.f32 %v2479_v59, %v2478_v31  ;;  %v2481_v9 = vpop.f32.mrb[70].mxu0 }
 0x25c   :  { %v2391_v16 = vpop.f32.mrb[77].mxu1  ;;  %v2482_v8 = vpop.f32.mrb[71].mxu0 }
 0x25d   :  { %v3775_v62 = vadd.f32 %v2391_v16, %v2390_v14  ;;  %v2393_v58 = vpop.f32.mrb[78].mxu1  ;;  %v1962_v6 = vadd.f32 %v2480_v4, %v1801_v39  ;;  %v2483_v42 = vadd.f32 %v2482_v8, %v2481_v9  ;;  %v1817_v39 = vadd.f32 %v3758_v46, %v3658_v21 }
 0x25e   :  { %v2394_v11 = vpop.f32.mrb[79].mxu1 }
 0x25f   :  { %v3779_v51 = vadd.f32 %v2394_v11, %v2393_v58  ;;  %v1965_v36 = vadd.f32 %v2483_v42, %v1804_v13  ;;  %v2040_v61 = vmax.f32 %v1962_v6, 0.0 }
 0x261   :  { %v2041_v60 = vmax.f32 %v1965_v36, 0.0  ;;  %v2484_v49 = vpop.f32.mrb[72].mxu0 }
 0x262   :  { %v2485_v0 = vpop.f32.mrb[73].mxu0 }
 0x263   :  { %v2396_v40 = vpop.f32.mrb[80].mxu1  ;;  %v2486_v57 = vadd.f32 %v2485_v0, %v2484_v49  ;;  %v2487_v15 = vpop.f32.mrb[74].mxu0  ;;  %v2065_v12 = vpack.c.bf16 %v2041_v60, %v2040_v61 }
 0x264   :  { %v2397_v47 = vpop.f32.mrb[81].mxu1  ;;  %v2488_v30 = vpop.f32.mrb[75].mxu0 }
 0x265   :  { %v3783_v23 = vadd.f32 %v2397_v47, %v2396_v40  ;;  %v2399_v34 = vpop.f32.mrb[82].mxu1  ;;  %v1970_v33 = vadd.f32 %v2486_v57, %v1809_v27  ;;  %v2489_v53 = vadd.f32 %v2488_v30, %v2487_v15  ;;  %2526 = vmatprep.subr.bf16.mxu1 %v2065_v12  ;;  %v1825_v40 = vadd.f32 %v3766_v45, %v3666_v29 }
 0x266   :  { %v2400_v7 = vpop.f32.mrb[83].mxu1  ;;  %2527 = vmatpush3.bf16.msra.mxu1 %v3699_v25  ;;  %v1820_v25 = vadd.f32 %v3761_v50, %v3660_v20  ;;  %v1828_v12 = vadd.f32 %v3769_v35, %v3668_v44  ;;  %v1836_v44 = vadd.f32 %v3779_v51, %v3682_v1 }
 0x267   :  { %v3787_v63 = vadd.f32 %v2400_v7, %v2399_v34  ;;  %v1973_v10 = vadd.f32 %v2489_v53, %v1812_v52  ;;  %v2042_v3 = vmax.f32 %v1970_v33, 0.0 }
 0x269   :  { %v2043_v54 = vmax.f32 %v1973_v10, 0.0  ;;  %v2490_v31 = vpop.f32.mrb[76].mxu0  ;;  %v1833_v10 = vadd.f32 %v3775_v62, %v3680_v24  ;;  %v1841_v24 = vadd.f32 %v3783_v23, %v3706_v55  ;;  %v1844_v1 = vadd.f32 %v3787_v63, %v3708_v22 }
 0x26a   :  { %v2491_v59 = vpop.f32.mrb[77].mxu0 }
 0x26b   :  { %v2402_v14 = vpop.f32.mrb[84].mxu1  ;;  %v2492_v4 = vadd.f32 %v2491_v59, %v2490_v31  ;;  %v2493_v5 = vpop.f32.mrb[78].mxu0  ;;  %v2066_v41 = vpack.c.bf16 %v2043_v54, %v2042_v3 }
 0x26c   :  { %v2403_v16 = vpop.f32.mrb[85].mxu1  ;;  %v2494_v8 = vpop.f32.mrb[79].mxu0 }
 0x26d   :  { %v3792_v9 = vadd.f32 %v2403_v16, %v2402_v14  ;;  %v2405_v58 = vpop.f32.mrb[86].mxu1  ;;  %v1978_v13 = vadd.f32 %v2492_v4, %v1817_v39  ;;  %v2495_v6 = vadd.f32 %v2494_v8, %v2493_v5  ;;  %2528 = vmatprep.subr.bf16.mxu1 %v2066_v41 }
 0x26e   :  { %v2406_v42 = vpop.f32.mrb[87].mxu1  ;;  %2529 = vmatpush3.bf16.msra.mxu1 %v3711_v26 }
 0x26f   :  { %v3796_v11 = vadd.f32 %v2406_v42, %v2405_v58  ;;  %v1981_v21 = vadd.f32 %v2495_v6, %v1820_v25  ;;  %v2044_v46 = vmax.f32 %v1978_v13, 0.0  ;;  %v1849_v55 = vadd.f32 %v3792_v9, %v3729_v17 }
 0x271   :  { %v2045_v36 = vmax.f32 %v1981_v21, 0.0  ;;  %v2496_v61 = vpop.f32.mrb[80].mxu0  ;;  %v1852_v22 = vadd.f32 %v3796_v11, %v3731_v18 }
 0x272   :  { %v2497_v49 = vpop.f32.mrb[81].mxu0 }
 0x273   :  { %v2408_v60 = vpop.f32.mrb[88].mxu1  ;;  %v2498_v0 = vadd.f32 %v2497_v49, %v2496_v61  ;;  %v2499_v20 = vpop.f32.mrb[82].mxu0  ;;  %v2067_v50 = vpack.c.bf16 %v2045_v36, %v2044_v46 }
 0x274   :  { %v2409_v27 = vpop.f32.mrb[89].mxu1  ;;  %v2500_v15 = vpop.f32.mrb[83].mxu0 }
 0x275   :  { %v2410_v57 = vadd.f32 %v2409_v27, %v2408_v60  ;;  %v2411_v47 = vpop.f32.mrb[90].mxu1  ;;  %v1986_v26 = vadd.f32 %v2498_v0, %v1825_v40  ;;  %v2501_v34 = vadd.f32 %v2500_v15, %v2499_v20  ;;  %2530 = vmatprep.subr.bf16.mxu1 %v2067_v50 }
 0x276   :  { %v2412_v30 = vpop.f32.mrb[91].mxu1  ;;  %2531 = vmatpush3.bf16.msra.mxu1 %v3721_v48 }
 0x277   :  { %v2413_v52 = vadd.f32 %v2412_v30, %v2411_v47  ;;  %v1989_v33 = vadd.f32 %v2501_v34, %v1828_v12  ;;  %v2046_v53 = vmax.f32 %v1986_v26, 0.0  ;;  %v1857_v20 = vadd.f32 %v2410_v57, %v3751_v32 }
 0x278   :  { %v2267_v30 = vcombine.low %v3689_v56, %v3689_v56 }
 0x279   :  { %v2047_v29 = vmax.f32 %v1989_v33, 0.0  ;;  %v2502_v45 = vpop.f32.mrb[84].mxu0  ;;  %v1860_v15 = vadd.f32 %v2413_v52, %v3753_v28  ;;  %v2121_v28 = vstv %s3846_s6 }
 0x27a   :  { %v2503_v7 = vpop.f32.mrb[85].mxu0 }
 0x27b   :  { %v2504_v3 = vadd.f32 %v2503_v7, %v2502_v45  ;;  %v2505_v54 = vpop.f32.mrb[86].mxu0  ;;  %v2068_v31 = vpack.c.bf16 %v2047_v29, %v2046_v53 }
 0x27c   :  { %v2506_v14 = vpop.f32.mrb[87].mxu0 }
 0x27d   :  { %v1994_v35 = vadd.f32 %v2504_v3, %v1833_v10  ;;  %v2507_v59 = vadd.f32 %v2506_v14, %v2505_v54  ;;  %2532 = vmatprep.subr.bf16.mxu1 %v2068_v31 }
 0x27e   :  { %2533 = vmatpush3.bf16.msra.mxu1 %v3735_v19 }
 0x27f   :  { %v1997_v48 = vadd.f32 %v2507_v59, %v1836_v44  ;;  %v2048_v39 = vmax.f32 %v1994_v35, 0.0 }
 0x281   :  { %v2049_v4 = vmax.f32 %v1997_v48, 0.0  ;;  %v2508_v16 = vpop.f32.mrb[88].mxu0 }
 0x282   :  { %v2509_v5 = vpop.f32.mrb[89].mxu0 }
 0x283   :  { %v2510_v62 = vadd.f32 %v2509_v5, %v2508_v16  ;;  %v2511_v41 = vpop.f32.mrb[90].mxu0  ;;  %v2069_v58 = vpack.c.bf16 %v2049_v4, %v2048_v39 }
 0x284   :  { %v2512_v8 = vpop.f32.mrb[91].mxu0 }
 0x285   :  { %v2002_v51 = vadd.f32 %v2510_v62, %v1841_v24  ;;  %v2513_v25 = vadd.f32 %v2512_v8, %v2511_v41  ;;  %2534 = vmatprep.subr.bf16.mxu1 %v2069_v58 }
 0x286   :  { %2535 = vmatpush3.bf16.msra.mxu1 %v3744_v38 }
 0x287   :  { %v2005_v19 = vadd.f32 %v2513_v25, %v1844_v1  ;;  %v2050_v13 = vmax.f32 %v2002_v51, 0.0 }
 0x289   :  { %v2051_v6 = vmax.f32 %v2005_v19, 0.0  ;;  %v2514_v42 = vpop.f32.mrb[92].mxu0 }
 0x28a   :  { %v2515_v21 = vpop.f32.mrb[93].mxu0 }
 0x28b   :  { %v2516_v23 = vadd.f32 %v2515_v21, %v2514_v42  ;;  %v2517_v46 = vpop.f32.mrb[94].mxu0  ;;  %v2070_v36 = vpack.c.bf16 %v2051_v6, %v2050_v13 }
 0x28c   :  { %v2518_v61 = vpop.f32.mrb[95].mxu0 }
 0x28d   :  { %v2010_v63 = vadd.f32 %v2516_v23, %v1849_v55  ;;  %v2519_v60 = vadd.f32 %v2518_v61, %v2517_v46  ;;  %2536 = vmatprep.subr.bf16.mxu1 %v2070_v36 }
 0x28e   :  { %2537 = vmatpush3.bf16.msra.mxu1 %v3756_v37 }
 0x28f   :  { %v2013_v38 = vadd.f32 %v2519_v60, %v1852_v22  ;;  %v2052_v49 = vmax.f32 %v2010_v63, 0.0 }
 0x291   :  { %v2053_v40 = vmax.f32 %v2013_v38, 0.0  ;;  %v2520_v0 = vpop.f32.mrb[96].mxu0 }
 0x292   :  { %v2521_v27 = vpop.f32.mrb[97].mxu0 }
 0x293   :  { %v2522_v17 = vadd.f32 %v2521_v27, %v2520_v0  ;;  %v2523_v9 = vpop.f32.mrb[98].mxu0  ;;  %v2071_v50 = vpack.c.bf16 %v2053_v40, %v2052_v49 }
 0x294   :  { %v2524_v47 = vpop.f32.mrb[99].mxu0 }
 0x295   :  { %v2018_v12 = vadd.f32 %v2522_v17, %v1857_v20  ;;  %v2525_v18 = vadd.f32 %v2524_v47, %v2523_v9  ;;  %2538 = vmatprep.subr.bf16.mxu1 %v2071_v50 }
 0x296   :  { %2539 = vmatpush3.bf16.msra.mxu1 %v3764_v43 }
 0x297   :  { %v2021_v11 = vadd.f32 %v2525_v18, %v1860_v15  ;;  %v2054_v37 = vmax.f32 %v2018_v12, 0.0 }
 0x299   :  { %v2055_v26 = vmax.f32 %v2021_v11, 0.0 }
 0x29b   :  { %v2072_v34 = vpack.c.bf16 %v2055_v26, %v2054_v37 }
 0x29d   :  { %2540 = vmatprep.subr.bf16.mxu1 %v2072_v34 }
 0x29e   :  { %2541 = vmatpush3.bf16.msra.mxu1 %v3773_v2 }
 0x2a1   :  { %2113 = vmatmul.mubr.bf16.vlgmr.msra.gmra.mrb[92].mxu1 %v2267_v30 }
 0x374   :  { %v2542_v32 = vpop.f32.mrb[92].mxu1 }
 0x375   :  { %v2543_v57 = vpop.f32.mrb[93].mxu1 }
 0x376   :  { %v2544_v43 = vadd.f32 %v2543_v57, %v2542_v32  ;;  %v2545_v52 = vpop.f32.mrb[94].mxu1 }
 0x377   :  { %v2546_v33 = vpop.f32.mrb[95].mxu1 }
 0x378   :  { %v2122_v53 = vadd.f32 %v2544_v43, %v2121_v28 }
 0x37a   :  { %2124 = vst.msk [vmem:[#allocation3] sm:$0x1] %vm2123_vm2, %v2122_v53 }
 0x37b   :  { %2763 = shalt.err (!%p2760_p4)
}
 0x37c   :  { %s2764_s6 = scalar_lea.hbm %s3847_s7, 16 }
 0x37d   :  { %p2765_p5 = scmp.ne.s32.totalorder %s3847_s7, %s2764_s6  ;;  %p2768_p6 = scmp.lt.u32.totalorder %s2764_s6, %s3847_s7 }
 0x37f   :  { %p2770_p7 = pnand %p2768_p6, %p2765_p5 }
 0x381   :  { %2773 = shalt.err (!%p2770_p7)
}
 0x382   :  { %2134 = dma.vmem_to_hbm [thread:$0]  %s2132_s9, 16, %s3847_s7, [#allocation4]  }
 0x383   :  { %2774 = dma.done.wait [#allocation4], 16  }
 0x384   :  { %2775 = vsyncadd [#allocation4], 4294967280 }
 0x385   :  { %2138 = vsyncpa [#allocation4], 1 }

</bundles_post_ra>
